<compile_context>
chip_gen: v6e
topology: v6e:2x2x1
jax: 0.10.0
libtpu: 0.0.40
codegen_flags: <defaults>
</compile_context>

<pallas_src>
from functools import partial

import jax
import jax.numpy as jnp
from jax.experimental import pallas as pl
from jax.experimental.pallas import tpu as pltpu


_LANES = 128      # lane (last-dim) width of the 2-D slab
_SUBLANES = 8     # sublane quantum
_GRID = 4         # grid steps over the sublane axis


# ---------------------------------------------------------------------------
# Stateless Bernoulli(0.5) mask: fmix32 hash of (seed, flat element index).
# int32 mul/add wrap mod 2^32 exactly like uint32; shifts are logical; the
# sign bit of a well-mixed word is a fair coin.
# ---------------------------------------------------------------------------
def _keep_from_index(seed_i32, idx_i32):
    h = idx_i32 ^ (seed_i32 * jnp.int32(-1640531527))          # seed * 0x9E3779B9
    h = h ^ jax.lax.shift_right_logical(h, jnp.int32(16))
    h = h * jnp.int32(-2048144789)                             # 0x85EBCA6B
    h = h ^ jax.lax.shift_right_logical(h, jnp.int32(13))
    h = h * jnp.int32(-1028477387)                             # 0xC2B2AE35
    h = h ^ jax.lax.shift_right_logical(h, jnp.int32(16))
    return h >= 0                                              # P(keep) = 0.5


def _keep_mask_2d(seed, shape):
    """Plain-JAX mask over the padded (rows, 128) slab (same bits as kernel)."""
    rows, lanes = shape
    row = jax.lax.broadcasted_iota(jnp.int32, shape, 0)
    col = jax.lax.broadcasted_iota(jnp.int32, shape, 1)
    return _keep_from_index(jnp.int32(seed), row * lanes + col)


def _padded_rows(total):
    rows = -(-total // _LANES)
    quantum = _SUBLANES * _GRID
    return -(-rows // quantum) * quantum


# ---------------------------------------------------------------------------
# Pallas kernel: inverted dropout, p = 0.5, on one (rows/GRID, 128) block.
# ---------------------------------------------------------------------------
def _dropout_kernel(seed_ref, x_ref, o_ref):
    rows, lanes = x_ref.shape                      # static block shape
    base = pl.program_id(0) * (rows * lanes)       # global flat offset of block
    row = jax.lax.broadcasted_iota(jnp.int32, (rows, lanes), 0)
    col = jax.lax.broadcasted_iota(jnp.int32, (rows, lanes), 1)
    idx = base + row * lanes + col                 # global element index
    keep = _keep_from_index(seed_ref[0], idx)      # Bernoulli(0.5)
    x = x_ref[...]
    # inverted dropout: kept elements scaled by 1/(1-p) = 2  ->  x + x
    o_ref[...] = jnp.where(keep, x + x, 0.0)


def _pallas_dropout2d(x2d, seed):
    rows, lanes = x2d.shape
    block_rows = rows // _GRID
    seed_arr = jnp.full((1,), seed, dtype=jnp.int32)
    return pl.pallas_call(
        _dropout_kernel,
        out_shape=jax.ShapeDtypeStruct((rows, lanes), jnp.float32),
        grid=(_GRID,),
        in_specs=[
            pl.BlockSpec(memory_space=pltpu.MemorySpace.SMEM),        # seed
            pl.BlockSpec((block_rows, lanes), lambda i: (i, 0)),      # image slab
        ],
        out_specs=pl.BlockSpec((block_rows, lanes), lambda i: (i, 0)),
        compiler_params=pltpu.CompilerParams(
            dimension_semantics=("parallel",)),
    )(seed_arr, x2d)


# ---------------------------------------------------------------------------
# custom_vjp so the image parameter can be optimized by gradient descent
# (DreamMap's whole purpose).  Backward: g * mask * 2, mask regenerated
# from the seed (no extra HBM mask tensor, no autodiff through pallas_call).
# ---------------------------------------------------------------------------
@partial(jax.custom_vjp, nondiff_argnums=(1,))
def _dropout2d(x2d, seed):
    return _pallas_dropout2d(x2d, seed)


def _dropout2d_fwd(x2d, seed):
    return _pallas_dropout2d(x2d, seed), None


def _dropout2d_bwd(seed, _res, g):
    keep = _keep_mask_2d(seed, g.shape)
    return (jnp.where(keep, g + g, 0.0),)


_dropout2d.defvjp(_dropout2d_fwd, _dropout2d_bwd)


# ---------------------------------------------------------------------------
# Forward pass of DreamMap.
# ---------------------------------------------------------------------------
def dreammap_forward(image_nchw, seed=0, training=True):
    """DreamMap.forward(): Dropout(p=0.5) over the image parameter.

    `seed` must be a Python int; pass a different seed every training step to
    match nn.Dropout semantics (a fixed seed reuses the same mask).
    """
    if not training:
        return image_nchw                          # nn.Dropout is identity in eval

    shape = image_nchw.shape
    total = image_nchw.size
    rows = _padded_rows(total)
    # Lane-dense layout plumbing: flatten, pad to rows*128, run kernel, unpad.
    x_flat = image_nchw.reshape(-1).astype(jnp.float32)
    x2d = jnp.pad(x_flat, (0, rows * _LANES - total)).reshape(rows, _LANES)
    out2d = _dropout2d(x2d, int(seed))
    return out2d.reshape(-1)[:total].reshape(shape)


def _reference_keep_mask(seed, shape):
    """Exact keep-mask the kernel applies, reshaped to the image shape."""
    total = 1
    for d in shape:
        total *= d
    rows = _padded_rows(total)
    m2d = _keep_mask_2d(seed, (rows, _LANES))
    return m2d.reshape(-1)[:total].reshape(shape)


def build_dreammap_params(key):
    """Deterministically build DreamMap.__init__'s `image` parameter.

    self.image = Parameter(X + noise), noise ~ Normal(0, 3), shape (1,3,300,300).
    """
    k_noise, k_img = jax.random.split(key)
    noise = 3.0 * jax.random.normal(k_noise, (1, 3, 300, 300), dtype=jnp.float32)
    # TODO(synk): original loads './101_ObjectCategories/stop_sign/image_0061.jpg';
    # no file I/O allowed, so synthesize a deterministic uint8-range image instead.
    x_hwc = jax.random.uniform(k_img, (300, 300, 3), dtype=jnp.float32) * 255.0
    x_nchw = jnp.transpose(x_hwc[None, ...], (0, 3, 1, 2))   # NHWC -> NCHW
    return x_nchw + noise


if __name__ == "__main__":
    key = jax.random.PRNGKey(0)
    image_param = build_dreammap_params(key)                 # (1, 3, 300, 300)

    out = jax.block_until_ready(dreammap_forward(image_param, seed=0, training=True))
    assert out.shape == (1, 3, 300, 300)

    # Exact check: output is 2*x where kept, 0 where dropped.
    keep = _reference_keep_mask(0, out.shape)
    expected = jnp.where(keep, 2.0 * image_param, 0.0)
    assert bool(jnp.array_equal(out, expected))

    # Roughly half the elements kept.
    frac_kept = float(jnp.mean(keep.astype(jnp.float32)))
    assert 0.4 < frac_kept < 0.6, frac_kept

    # Eval mode is identity.
    assert bool(jnp.array_equal(dreammap_forward(image_param, training=False),
                                image_param))

    # Gradients flow through the custom_vjp: d(sum(out))/d(image) = 2 * mask.
    grad = jax.grad(
        lambda img: jnp.sum(dreammap_forward(img, seed=0, training=True))
    )(image_param)
    assert bool(jnp.array_equal(grad, jnp.where(keep, 2.0, 0.0).astype(jnp.float32)))

    print("KERNEL_OK")
</pallas_src>

<mosaic_0001>
module attributes {stable_mosaic.version = 11 : i64} {
  func.func @_dropout_kernel(%arg0: i32, %arg1: memref<1xi32, #tpu.memory_space<smem>>, %arg2: memref<528x128xf32, #tpu.memory_space<vmem>>, %arg3: memref<528x128xf32, #tpu.memory_space<vmem>>) attributes {dimension_semantics = [#tpu.dimension_semantics<parallel>], iteration_bounds = array<i64: 4>, scalar_prefetch = 0 : i64, scratch_operands = 0 : i64, tpu.core_type = #tpu.core_type<tc>, window_params = [{transform_indices = @transform_0, window_bounds = array<i64: 1>}, {transform_indices = @transform_1, window_bounds = array<i64: 528, 128>}, {transform_indices = @transform_2, window_bounds = array<i64: 528, 128>}]} {
    %c67584_i32 = arith.constant 67584 : i32
    %0 = arith.muli %arg0, %c67584_i32 : i32
    %1 = tpu.iota {dimensions = array<i32: 0>} : vector<528x128xi32>
    %2 = tpu.iota {dimensions = array<i32: 1>} : vector<528x128xi32>
    %c128_i32 = arith.constant 128 : i32
    %3 = vector.broadcast %c128_i32 : i32 to vector<528x128xi32>
    %4 = arith.muli %1, %3 : vector<528x128xi32>
    %5 = vector.broadcast %0 : i32 to vector<528x128xi32>
    %6 = arith.addi %5, %4 : vector<528x128xi32>
    %7 = arith.addi %6, %2 : vector<528x128xi32>
    %c0 = arith.constant 0 : index
    %8 = memref.load %arg1[%c0] : memref<1xi32, #tpu.memory_space<smem>>
    %c-1640531527_i32 = arith.constant -1640531527 : i32
    %9 = arith.muli %8, %c-1640531527_i32 : i32
    %10 = vector.broadcast %9 : i32 to vector<528x128xi32>
    %11 = arith.xori %7, %10 : vector<528x128xi32>
    %c16_i32 = arith.constant 16 : i32
    %12 = vector.broadcast %c16_i32 : i32 to vector<528x128xi32>
    %13 = arith.shrui %11, %12 : vector<528x128xi32>
    %14 = arith.xori %11, %13 : vector<528x128xi32>
    %c-2048144789_i32 = arith.constant -2048144789 : i32
    %15 = vector.broadcast %c-2048144789_i32 : i32 to vector<528x128xi32>
    %16 = arith.muli %14, %15 : vector<528x128xi32>
    %c13_i32 = arith.constant 13 : i32
    %17 = vector.broadcast %c13_i32 : i32 to vector<528x128xi32>
    %18 = arith.shrui %16, %17 : vector<528x128xi32>
    %19 = arith.xori %16, %18 : vector<528x128xi32>
    %c-1028477387_i32 = arith.constant -1028477387 : i32
    %20 = vector.broadcast %c-1028477387_i32 : i32 to vector<528x128xi32>
    %21 = arith.muli %19, %20 : vector<528x128xi32>
    %c16_i32_0 = arith.constant 16 : i32
    %22 = vector.broadcast %c16_i32_0 : i32 to vector<528x128xi32>
    %23 = arith.shrui %21, %22 : vector<528x128xi32>
    %24 = arith.xori %21, %23 : vector<528x128xi32>
    %c0_i32 = arith.constant 0 : i32
    %25 = vector.broadcast %c0_i32 : i32 to vector<528x128xi32>
    %26 = arith.cmpi sge, %24, %25 : vector<528x128xi32>
    %c0_1 = arith.constant 0 : index
    %c0_2 = arith.constant 0 : index
    %27 = vector.load %arg2[%c0_1, %c0_2] : memref<528x128xf32, #tpu.memory_space<vmem>>, vector<528x128xf32>
    %28 = arith.addf %27, %27 : vector<528x128xf32>
    %cst = arith.constant 0.000000e+00 : f32
    %29 = vector.broadcast %cst : f32 to vector<528x128xf32>
    %30 = arith.select %26, %28, %29 : vector<528x128xi1>, vector<528x128xf32>
    %c0_3 = arith.constant 0 : index
    %c0_4 = arith.constant 0 : index
    %31 = vector.load %arg3[%c0_3, %c0_4] : memref<528x128xf32, #tpu.memory_space<vmem>>, vector<528x128xf32>
    tpu.vector_store %arg3[%c0_3, %c0_4], %30 {strides = array<i32>} : memref<528x128xf32, #tpu.memory_space<vmem>>, vector<528x128xf32>,
    return
  }
  func.func @transform_0(%arg0: i32) -> i32 {
    %c0_i32 = arith.constant 0 : i32
    %c0_i32_0 = arith.constant 0 : i32
    return %c0_i32 : i32
  }
  func.func @transform_1(%arg0: i32) -> (i32, i32) {
    %c0_i32 = arith.constant 0 : i32
    %c0_i32_0 = arith.constant 0 : i32
    return %arg0, %c0_i32 : i32, i32
  }
  func.func @transform_2(%arg0: i32) -> (i32, i32) {
    %c0_i32 = arith.constant 0 : i32
    %c0_i32_0 = arith.constant 0 : i32
    return %arg0, %c0_i32 : i32, i32
  }
}

</mosaic_0001>

<bundles_post_ra>
// kernel: tpu_custom_call.1
= control target key start
LH: loop header
LB: loop body
LE: loop exit
PB: predicated region body
PF: predicated region fallthrough
CT: control target
= control target key end

     0   :  { %s2248_s0 = inlined_call_operand.<no memory space> [shape: s32[1], index: 0, kind: input, shape index: {}]   ;;  %s2249_s1 = inlined_call_operand.hbm [shape: f32[2112,128], index: 1, kind: input, shape index: {}]   ;;  %s2250_s2 = inlined_call_operand.hbm [shape: f32[2112,128], index: 2, kind: output, shape index: {}]  }
   0x1   :  { %7 = sst [smem:[#allocation2]] %s2248_s0 }
   0x2   :  { %8 = vsyncpa [#allocation4], 0 }
   0x3   :  { %10 = vsyncpa [#allocation4 + $0x1], 0 }
   0x4   :  { %11 = vsyncpa [#allocation5], 0 }
   0x5   :  { %13 = vsyncpa [#allocation5 + $0x1], 0  ;;  %s1628_s11 = smov 0   ;;  %s1630_s12 = smov 0  }
   0x6   :  { %s1632_s13 = smov 0   ;;  %s1634_s14 = smov 0  }
   0x7 LB: > { %s1649_s0 = sadd.s32 4294967295, %s1602_s14   ;;  %s1448_s15 = sadd.s32 4294967294, %s1602_s14   ;;  %s1602_s14 = sphi %s1634_s14, %s2263_s14   ;;  %s1598_s13 = sphi %s1632_s13, %s2262_s13   ;;  %s1594_s12 = sphi %s1630_s12, %s2261_s12   ;;  %s1590_s11 = sphi %s1628_s11, %s2260_s11  }
   0x8   : > { %s1653_s16 = sadd.s32 1, %s1602_s14   ;;  %s47_s17 = sadd.s32 1, %s1598_s13 }
   0x9   : > { %s44_s18 = ssub.s32 %s1602_s14, %s1653_s16  ;;  %p54_p0 = scmp.ne.s32.totalorder %s1598_s13, %s1594_s12 }
   0xa   : > { %p45_p1 = scmp.eq.s32.totalorder %s44_s18, 0  ;;  %p55_p2 = scmp.eq.s32.totalorder %s1602_s14, 0 }
   0xb   : > { %p60_p3 = scmp.ne.s32.totalorder %s1594_s12, %s1590_s11  ;;  %p61_p4 = scmp.eq.s32.totalorder %s1649_s0, 0 }
   0xc   : > { %s1665_s19 = scalar_select %p45_p1, %s1598_s13, %s47_s17  }
   0xd   : > { %p56_p5 = por %p55_p2, %p54_p0  ;;  %p1667_p6 = por %p61_p4, %p60_p3 }
   0xe   : > { %p84_p7 = scmp.eq.s32.totalorder %s1649_s0, 3  ;;  %p90_p8 = scmp.eq.s32.totalorder %s1448_s15, 3 }
   0xf   : > { %s2253_s20 = scalar_select %p1667_p6, 1, 0 }
  0x10   : > { %p1472_p9 = scmp.lt.s32.totalorder %s1602_s14, 4  ;;  %p1673_p10 = por %p84_p7, %p54_p0 }
  0x11   : > { %p1677_p11 = por %p90_p8, %p60_p3  ;;  %s113_s23 = sand.u32 1, %s1598_s13  }
  0x12   : > { %s2254_s21 = scalar_select %p1673_p10, 1, 0 }
  0x13   : > { %s2255_s22 = scalar_select %p1677_p11, 1, 0 }
  0x14   : > { %s1456_s24 = smul.u32 8448, %s1602_s14  ;;  %p1688_p12 = pnand %p1472_p9, %p56_p5 }
  0x15   : > { %s1458_s25 = smul.u32 528, %s113_s23  ;;  %s1694_s4 = scalar_lea.sflag [#allocation4], %s113_s23 }
  0x16   : > { %s1686_s28 = scalar_lea.hbm %s2249_s1, %s1456_s24  ;;  %p1512_p0 = pneg %p1688_p12 }
  0x17   : > { %s117_s30 = scalar_lea.vmem [#allocation3], %s1458_s25  ;;  %s1510_s5 = scalar_lea.hbm %s1686_s28, 8448 }
  0x18   : > { %s124_s3 = sshll.u32 %s117_s30, 4  ;;  %p1511_p13 = scmp.ne.s32.totalorder %s1686_s28, %s1510_s5  ;;  %s1692_s3 = int_to_ptr.vmem [resolvable:$true] %s124_s3 }
  0x19   : > { %s1515_s8 = scalar_lea.hbm %s2249_s1, 33792  ;;  %p1516_p3 = scmp.lt.s32.totalorder %s1686_s28, %s2249_s1 }
  0x1a   : > { %p1513_p1 = pnand %p1512_p0, %p1511_p13  ;;  %p1517_p4 = scmp.lt.s32.totalorder %s1515_s8, %s1510_s5 }
  0x1c   : > { %p1514_p2 = pneg %p1513_p1  ;;  %p1518_p5 = por %p1517_p4, %p1516_p3 }
  0x1e   : > { %p1519_p7 = pnand %p1518_p5, %p1514_p2 }
  0x20   : > { %1522 = shalt.err (!%p1519_p7)
}
  0x21   : > { %s1523_s15 = scalar_lea.vmem %s1692_s3, 8448  ;;  %s1604_s17 = smov [#allocation3]  }
  0x22   : > { %p1524_p8 = scmp.ne.s32.totalorder %s1692_s3, %s1523_s15  ;;  %s1528_s18 = sshll.u32 %s1604_s17, 4  ;;  %s1529_s18 = int_to_ptr.vmem [resolvable:$false] %s1528_s18 }
  0x23   : > { %s1530_s23 = scalar_lea.vmem %s1529_s18, 16896  ;;  %p1531_p1 = scmp.lt.s32.totalorder %s1692_s3, %s1529_s18 }
  0x24   : > { %p1526_p9 = pnand %p1524_p8, %p1512_p0  ;;  %p1532_p11 = scmp.lt.s32.totalorder %s1530_s23, %s1523_s15 }
  0x26   : > { %p1527_p13 = pneg %p1526_p9  ;;  %p1533_p10 = por %p1532_p11, %p1531_p1 }
  0x28   : > { %p1534_p6 = pnand %p1533_p10, %p1527_p13 }
  0x2a   : > { %1537 = shalt.err (!%p1534_p6)
}
  0x2b   : > { %s1605_s24 = smov 128   ;;  %s1606_s25 = smov 8  }
  0x2c   : > { %1467 = dma.hbm_to_vmem [thread:$0]  (!%p1688_p12), %s1686_s28, 8448, %s1692_s3, %s1694_s4, %s1605_s24, %s1605_s24, %s1606_s25  }
  0x2d   : > { %p1452_p0 = scmp.ge.s32.totalorder %s1602_s14, 1  ;;  %p132_p2 = scmp.lt.s32.totalorder %s1602_s14, 5 }
  0x2f   : > { %p133_p3 = pnand %p1452_p0, %p132_p2 }
  0x30   : > { %s1718_s26 = sand.u32 (!%p133_p3), 1, %s1594_s12   ;;  %p2257_p6 = scmp.ne.s32.totalorder (!%p133_p3), %s2253_s20, 0 }
  0x31   : > { %136 = sbr.rel (%p133_p3) target bundleno = 348 (0x15c), region = 28  ;;  %s139_s30 = scalar_lea.sflag (!%p133_p3), [#allocation4], %s1718_s26 }
  0x32   : > { %s1459_s27 = smul.u32 (!%p133_p3), 528, %s1718_s26 }
  0x34   : > { %s1724_s5 = scalar_lea.vmem (!%p133_p3), [#allocation3], %s1459_s27 }
  0x36   : > { %1581 = dma.done.wait (%p2257_p6), %s139_s30, 8448  }
  0x37   : > { %1583 = vsyncadd (%p2257_p6), %s139_s30, 4294958848  ;;  %s165_s28 = smul.u32 67584, %s1649_s0  ;;  %v166_v0 = vlaneseq  ;;  %s434_s29 = sld [smem:[#allocation2]]  ;;  %v1097_v13 = vld [vmem:[%s1724_s5] sm:$0xff]  ;;  %v1098_v14 = vld [vmem:[%s1724_s5 + $0x8] sm:$0xff] }
  0x38   : > { %v1099_v19 = vld [vmem:[%s1724_s5 + $0x10] sm:$0xff]  ;;  %v1756_v23 = vadd.f32 %v1097_v13, %v1097_v13  ;;  %v1100_v26 = vld [vmem:[%s1724_s5 + $0x18] sm:$0xff]  ;;  %v1763_v29 = vadd.f32 %v1098_v14, %v1098_v14  ;;  %v1101_v34 = vld [vmem:[%s1724_s5 + $0x20] sm:$0xff]  ;;  %s1793_s3 = scalar_lea.vmem [#allocation6], %s1459_s27  ;;  %s1457_s4 = smul.u32 8448, %s1649_s0 }
  0x39   : > { %v1731_v1 = vshrl.u32 %v166_v0, 7  ;;  %v1733_v2 = vand.u32 127, %v166_v0  ;;  %v1735_v3 = vstv %s165_s28  ;;  %v1766_v32 = vadd.f32 %v1099_v19, %v1099_v19  ;;  %s1375_s6 = sshll.u32 %s1793_s3, 4  ;;  %s1362_s0 = scalar_lea.sflag [#allocation5], %s1718_s26  ;;  %s2205_s6 = int_to_ptr.vmem [resolvable:$true] %s1375_s6 }
  0x3a   : > { %v1771_v38 = vadd.f32 %v1100_v26, %v1100_v26  ;;  %v1778_v47 = vadd.f32 %v1101_v34, %v1101_v34  ;;  %s2203_s9 = scalar_lea.hbm %s2250_s2, %s1457_s4  ;;  %s1538_s10 = scalar_lea.vmem %s2205_s6, 8448 }
  0x3b   : > { %v235_v4 = vmul.u32 128, %v1731_v1  ;;  %v168_v5 = vadd.s32 8, %v1731_v1  ;;  %v169_v6 = vadd.s32 16, %v1731_v1  ;;  %v170_v7 = vadd.s32 24, %v1731_v1  ;;  %p1539_p10 = scmp.ne.s32.totalorder %s2205_s6, %s1538_s10  ;;  %p2258_p11 = scmp.ne.s32.totalorder %s2254_s21, 0 }
  0x3c   : > { %v171_v8 = vadd.s32 32, %v1731_v1  ;;  %v172_v12 = vadd.s32 40, %v1731_v1  ;;  %v173_v16 = vadd.s32 48, %v1731_v1  ;;  %v174_v20 = vadd.s32 56, %v1731_v1  ;;  %s1607_s15 = smov [#allocation6]  }
  0x3d   : > { %v302_v9 = vadd.s32 %v1735_v3, %v235_v4  ;;  %v236_v10 = vmul.u32 128, %v168_v5  ;;  %v237_v11 = vmul.u32 128, %v169_v6  ;;  %s435_s20 = smul.u32 2654435769, %s434_s29  ;;  %v1752_v21 = vadd.s32 64, %v1731_v1  ;;  %p1540_p12 = pnand %p1539_p10, %p2258_p11 }
  0x3e   : > { %v238_v15 = vmul.u32 128, %v170_v7  ;;  %v239_v30 = vmul.u32 128, %v171_v8  ;;  %s1542_s17 = sshll.u32 %s1607_s15, 4  ;;  %s1543_s17 = int_to_ptr.vmem [resolvable:$false] %s1542_s17 }
  0x3f   : > { %v368_v17 = vadd.s32 %v302_v9, %v1733_v2  ;;  %v303_v18 = vadd.s32 %v1735_v3, %v236_v10  ;;  %v1754_v22 = vstv %s435_s20  ;;  %v304_v24 = vadd.s32 %v1735_v3, %v237_v11  ;;  %p1541_p4 = pneg %p1540_p12  ;;  %s1544_s18 = scalar_lea.vmem %s1543_s17, 16896 }
  0x40   : > { %v305_v25 = vadd.s32 %v1735_v3, %v238_v15  ;;  %v240_v35 = vmul.u32 128, %v172_v12  ;;  %v306_v39 = vadd.s32 %v1735_v3, %v239_v30  ;;  %v241_v43 = vmul.u32 128, %v173_v16  ;;  %p1545_p5 = scmp.lt.s32.totalorder %s2205_s6, %s1543_s17  ;;  %p1546_p7 = scmp.lt.s32.totalorder %s1544_s18, %s1538_s10 }
  0x41   : > { %v437_v27 = vxor.u32 %v1754_v22, %v368_v17  ;;  %v369_v28 = vadd.s32 %v303_v18, %v1733_v2  ;;  %v370_v31 = vadd.s32 %v304_v24, %v1733_v2  ;;  %v242_v55 = vmul.u32 128, %v174_v20  ;;  %v1102_v18 = vld [vmem:[%s1724_s5 + $0x28] sm:$0xff] }
  0x42   : > { %v371_v33 = vadd.s32 %v305_v25, %v1733_v2  ;;  %v307_v42 = vadd.s32 %v1735_v3, %v240_v35  ;;  %v372_v46 = vadd.s32 %v306_v39, %v1733_v2  ;;  %v308_v51 = vadd.s32 %v1735_v3, %v241_v43  ;;  %p1547_p8 = por %p1546_p7, %p1545_p5 }
  0x43   : > { %v503_v36 = vshrl.u32 %v437_v27, 16  ;;  %v438_v37 = vxor.u32 %v1754_v22, %v369_v28  ;;  %v439_v40 = vxor.u32 %v1754_v22, %v370_v31  ;;  %v309_v63 = vadd.s32 %v1735_v3, %v242_v55 }
  0x44   : > { %v440_v41 = vxor.u32 %v1754_v22, %v371_v33  ;;  %v373_v50 = vadd.s32 %v307_v42, %v1733_v2  ;;  %v441_v54 = vxor.u32 %v1754_v22, %v372_v46  ;;  %v374_v59 = vadd.s32 %v308_v51, %v1733_v2  ;;  %p1548_p9 = pnand %p1547_p8, %p1541_p4 }
  0x45   : > { %v569_v44 = vxor.u32 %v503_v36, %v437_v27  ;;  %v504_v45 = vshrl.u32 %v438_v37, 16  ;;  %v505_v48 = vshrl.u32 %v439_v40, 16  ;;  %v375_v10 = vadd.s32 %v309_v63, %v1733_v2 }
  0x46   : > { %v506_v49 = vshrl.u32 %v440_v41, 16  ;;  %v442_v58 = vxor.u32 %v1754_v22, %v373_v50  ;;  %v507_v62 = vshrl.u32 %v441_v54, 16  ;;  %v443_v6 = vxor.u32 %v1754_v22, %v374_v59  ;;  %v1104_v59 = vld [vmem:[%s1724_s5 + $0x38] sm:$0xff] }
  0x47   : > { %v635_v52 = vmul.u32 2246822507, %v569_v44  ;;  %v570_v53 = vxor.u32 %v504_v45, %v438_v37  ;;  %v571_v56 = vxor.u32 %v505_v48, %v439_v40  ;;  %v444_v19 = vxor.u32 %v1754_v22, %v375_v10 }
  0x48   : > { %v572_v57 = vxor.u32 %v506_v49, %v440_v41  ;;  %v508_v5 = vshrl.u32 %v442_v58, 16  ;;  %v573_v9 = vxor.u32 %v507_v62, %v441_v54  ;;  %v509_v14 = vshrl.u32 %v443_v6, 16 }
  0x49   : > { %v701_v60 = vshrl.u32 %v635_v52, 13  ;;  %v636_v61 = vmul.u32 2246822507, %v570_v53  ;;  %v637_v0 = vmul.u32 2246822507, %v571_v56  ;;  %v510_v31 = vshrl.u32 %v444_v19, 16 }
  0x4a   : > { %v638_v4 = vmul.u32 2246822507, %v572_v57  ;;  %v574_v13 = vxor.u32 %v508_v5, %v442_v58  ;;  %v639_v17 = vmul.u32 2246822507, %v573_v9  ;;  %v575_v26 = vxor.u32 %v509_v14, %v443_v6  ;;  %v1103_v56 = vld [vmem:[%s1724_s5 + $0x30] sm:$0xff] }
  0x4b   : > { %v767_v7 = vxor.u32 %v701_v60, %v635_v52  ;;  %v702_v8 = vshrl.u32 %v636_v61, 13  ;;  %v703_v11 = vshrl.u32 %v637_v0, 13  ;;  %v1168_v36 = vadd.f32 %v1102_v18, %v1102_v18 }
  0x4c   : > { %v704_v12 = vshrl.u32 %v638_v4, 13  ;;  %v640_v25 = vmul.u32 2246822507, %v574_v13  ;;  %v705_v30 = vshrl.u32 %v639_v17, 13  ;;  %v641_v41 = vmul.u32 2246822507, %v575_v26 }
  0x4d   : > { %v833_v15 = vmul.u32 3266489909, %v767_v7  ;;  %v768_v16 = vxor.u32 %v702_v8, %v636_v61  ;;  %v769_v20 = vxor.u32 %v703_v11, %v637_v0  ;;  %v576_v45 = vxor.u32 %v510_v31, %v444_v19  ;;  %v1105_v8 = vld [vmem:[%s1724_s5 + $0x40] sm:$0xff]  ;;  %v1106_v11 = vld [vmem:[%s1724_s5 + $0x48] sm:$0xff] }
  0x4e   : > { %v770_v24 = vxor.u32 %v704_v12, %v638_v4  ;;  %v706_v35 = vshrl.u32 %v640_v25, 13  ;;  %v771_v40 = vxor.u32 %v705_v30, %v639_v17  ;;  %v707_v49 = vshrl.u32 %v641_v41, 13  ;;  %v1108_v30 = vld [vmem:[%s1724_s5 + $0x58] sm:$0xff] }
  0x4f   : > { %v899_v27 = vshrl.u32 %v833_v15, 16  ;;  %v834_v28 = vmul.u32 3266489909, %v768_v16  ;;  %v835_v33 = vmul.u32 3266489909, %v769_v20  ;;  %v1169_v4 = vadd.f32 %v1103_v56, %v1103_v56 }
  0x50   : > { %v836_v34 = vmul.u32 3266489909, %v770_v24  ;;  %v772_v44 = vxor.u32 %v706_v35, %v640_v25  ;;  %v837_v48 = vmul.u32 3266489909, %v771_v40  ;;  %v773_v55 = vxor.u32 %v707_v49, %v641_v41 }
  0x51   : > { %v965_v37 = vxor.u32 %v899_v27, %v833_v15  ;;  %v900_v39 = vshrl.u32 %v834_v28, 16  ;;  %v901_v42 = vshrl.u32 %v835_v33, 16  ;;  %v642_v57 = vmul.u32 2246822507, %v576_v45 }
  0x52   : > { %v902_v43 = vshrl.u32 %v836_v34, 16  ;;  %v838_v53 = vmul.u32 3266489909, %v772_v44  ;;  %v903_v54 = vshrl.u32 %v837_v48, 16  ;;  %v839_v63 = vmul.u32 3266489909, %v773_v55 }
  0x53   : > { %vm1031_vm0 = vcmp.ge.s32.totalorder %v965_v37, 0  ;;  %v966_v46 = vxor.u32 %v900_v39, %v834_v28  ;;  %v967_v51 = vxor.u32 %v901_v42, %v835_v33  ;;  %v708_v5 = vshrl.u32 %v642_v57, 13 }
  0x54   : > { %v1229_v50 = vsel %vm1031_vm0, %v1756_v23, 0.0  ;;  %v968_v52 = vxor.u32 %v902_v43, %v836_v34  ;;  %v904_v23 = vshrl.u32 %v838_v53, 16  ;;  %v969_v62 = vxor.u32 %v903_v54, %v837_v48  ;;  %v1109_v48 = vld [vmem:[%s1724_s5 + $0x60] sm:$0xff] }
  0x55   : > { %1295 = vst [vmem:[%s1793_s3] sm:$0xff] %v1229_v50  ;;  %vm1032_vm1 = vcmp.ge.s32.totalorder %v966_v46, 0  ;;  %vm1033_vm2 = vcmp.ge.s32.totalorder %v967_v51, 0  ;;  %v905_v6 = vshrl.u32 %v839_v63, 16  ;;  %v1170_v7 = vadd.f32 %v1104_v59, %v1104_v59 }
  0x56   : > { %v1230_v58 = vsel %vm1032_vm1, %v1763_v29, 0.0  ;;  %vm1034_vm3 = vcmp.ge.s32.totalorder %v968_v52, 0  ;;  %v1231_v60 = vsel %vm1033_vm2, %v1766_v32, 0.0  ;;  %v970_v0 = vxor.u32 %v904_v23, %v838_v53 }
  0x57   : > { %1296 = vst [vmem:[%s1793_s3 + $0x8] sm:$0xff] %v1230_v58  ;;  %v1232_v61 = vsel %vm1034_vm3, %v1771_v38, 0.0  ;;  %1297 = vst [vmem:[%s1793_s3 + $0x10] sm:$0xff] %v1231_v60  ;;  %v243_v29 = vmul.u32 128, %v1752_v21  ;;  %vm1035_vm4 = vcmp.ge.s32.totalorder %v969_v62, 0  ;;  %v176_v32 = vadd.s32 72, %v1731_v1 }
  0x58   : > { %1298 = vst [vmem:[%s1793_s3 + $0x18] sm:$0xff] %v1232_v61  ;;  %v1233_v38 = vsel %vm1035_vm4, %v1778_v47, 0.0  ;;  %vm1036_vm5 = vcmp.ge.s32.totalorder %v970_v0, 0  ;;  %v774_v9 = vxor.u32 %v708_v5, %v642_v57  ;;  %v971_v13 = vxor.u32 %v905_v6, %v839_v63  ;;  %v1107_v47 = vld [vmem:[%s1724_s5 + $0x50] sm:$0xff] }
  0x59   : > { %v310_v10 = vadd.s32 %v1735_v3, %v243_v29  ;;  %1299 = vst [vmem:[%s1793_s3 + $0x20] sm:$0xff] %v1233_v38  ;;  %v1234_v12 = vsel %vm1036_vm5, %v1168_v36, 0.0  ;;  %v244_v14 = vmul.u32 128, %v176_v32  ;;  %v177_v21 = vadd.s32 80, %v1731_v1 }
  0x5a   : > { %1300 = vst [vmem:[%s1793_s3 + $0x28] sm:$0xff] %v1234_v12  ;;  %v840_v15 = vmul.u32 3266489909, %v774_v9  ;;  %v1814_v17 = vadd.f32 %v1105_v8, %v1105_v8  ;;  %v178_v18 = vadd.s32 88, %v1731_v1  ;;  %vm1037_vm6 = vcmp.ge.s32.totalorder %v971_v13, 0 }
  0x5b   : > { %v376_v16 = vadd.s32 %v310_v10, %v1733_v2  ;;  %v311_v19 = vadd.s32 %v1735_v3, %v244_v14  ;;  %v1819_v20 = vadd.f32 %v1106_v11, %v1106_v11  ;;  %v245_v24 = vmul.u32 128, %v177_v21 }
  0x5c   : > { %v1235_v25 = vsel %vm1037_vm6, %v1169_v4, 0.0  ;;  %v906_v26 = vshrl.u32 %v840_v15, 16  ;;  %v246_v28 = vmul.u32 128, %v178_v18  ;;  %v1826_v34 = vadd.f32 %v1107_v47, %v1107_v47 }
  0x5d   : > { %v445_v27 = vxor.u32 %v1754_v22, %v376_v16  ;;  %1301 = vst [vmem:[%s1793_s3 + $0x30] sm:$0xff] %v1235_v25  ;;  %v377_v31 = vadd.s32 %v311_v19, %v1733_v2  ;;  %v312_v33 = vadd.s32 %v1735_v3, %v245_v24  ;;  %v179_v35 = vadd.s32 96, %v1731_v1 }
  0x5e   : > { %v972_v36 = vxor.u32 %v906_v26, %v840_v15  ;;  %v313_v39 = vadd.s32 %v1735_v3, %v246_v28  ;;  %v180_v40 = vadd.s32 104, %v1731_v1  ;;  %v1833_v43 = vadd.f32 %v1108_v30, %v1108_v30 }
  0x5f   : > { %v511_v37 = vshrl.u32 %v445_v27, 16  ;;  %v446_v41 = vxor.u32 %v1754_v22, %v377_v31  ;;  %v378_v42 = vadd.s32 %v312_v33, %v1733_v2  ;;  %v247_v44 = vmul.u32 128, %v179_v35 }
  0x60   : > { %vm1038_vm7 = vcmp.ge.s32.totalorder %v972_v36, 0  ;;  %v379_v46 = vadd.s32 %v313_v39, %v1733_v2  ;;  %v248_v49 = vmul.u32 128, %v180_v40  ;;  %v181_v57 = vadd.s32 112, %v1731_v1 }
  0x61   : > { %v577_v45 = vxor.u32 %v511_v37, %v445_v27  ;;  %v1236_v50 = vsel %vm1038_vm7, %v1170_v7, 0.0  ;;  %v512_v51 = vshrl.u32 %v446_v41, 16  ;;  %v447_v52 = vxor.u32 %v1754_v22, %v378_v42 }
  0x62   : > { %v314_v53 = vadd.s32 %v1735_v3, %v247_v44  ;;  %1302 = vst [vmem:[%s1793_s3 + $0x38] sm:$0xff] %v1236_v50  ;;  %v448_v55 = vxor.u32 %v1754_v22, %v379_v46  ;;  %v315_v56 = vadd.s32 %v1735_v3, %v248_v49  ;;  %v1844_v60 = vadd.f32 %v1109_v48, %v1109_v48  ;;  %v1110_v48 = vld [vmem:[%s1724_s5 + $0x68] sm:$0xff] }
  0x63   : > { %v643_v54 = vmul.u32 2246822507, %v577_v45  ;;  %v578_v58 = vxor.u32 %v512_v51, %v446_v41  ;;  %v513_v23 = vshrl.u32 %v447_v52, 16  ;;  %v249_v0 = vmul.u32 128, %v181_v57 }
  0x64   : > { %v380_v59 = vadd.s32 %v314_v53, %v1733_v2  ;;  %v514_v62 = vshrl.u32 %v448_v55, 16  ;;  %v381_v63 = vadd.s32 %v315_v56, %v1733_v2  ;;  %v182_v6 = vadd.s32 120, %v1731_v1 }
  0x65   : > { %v709_v61 = vshrl.u32 %v643_v54, 13  ;;  %v644_v4 = vmul.u32 2246822507, %v578_v58  ;;  %v579_v5 = vxor.u32 %v513_v23, %v447_v52  ;;  %v316_v38 = vadd.s32 %v1735_v3, %v249_v0 }
  0x66   : > { %v449_v29 = vxor.u32 %v1754_v22, %v380_v59  ;;  %v580_v8 = vxor.u32 %v514_v62, %v448_v55  ;;  %v450_v32 = vxor.u32 %v1754_v22, %v381_v63  ;;  %v250_v12 = vmul.u32 128, %v182_v6 }
  0x67   : > { %v775_v7 = vxor.u32 %v709_v61, %v643_v54  ;;  %v710_v9 = vshrl.u32 %v644_v4, 13  ;;  %v645_v10 = vmul.u32 2246822507, %v579_v5  ;;  %v382_v15 = vadd.s32 %v316_v38, %v1733_v2 }
  0x68   : > { %v515_v11 = vshrl.u32 %v449_v29, 16  ;;  %v646_v14 = vmul.u32 2246822507, %v580_v8  ;;  %v516_v21 = vshrl.u32 %v450_v32, 16  ;;  %v317_v19 = vadd.s32 %v1735_v3, %v250_v12  ;;  %v1111_v8 = vld [vmem:[%s1724_s5 + $0x70] sm:$0xff] }
  0x69   : > { %v841_v13 = vmul.u32 3266489909, %v775_v7  ;;  %v776_v16 = vxor.u32 %v710_v9, %v644_v4  ;;  %v711_v47 = vshrl.u32 %v645_v10, 13  ;;  %v451_v27 = vxor.u32 %v1754_v22, %v382_v15 }
  0x6a   : > { %v581_v18 = vxor.u32 %v515_v11, %v449_v29  ;;  %v712_v25 = vshrl.u32 %v646_v14, 13  ;;  %v582_v26 = vxor.u32 %v516_v21, %v450_v32  ;;  %v383_v33 = vadd.s32 %v317_v19, %v1733_v2 }
  0x6b   : > { %v907_v24 = vshrl.u32 %v841_v13, 16  ;;  %v842_v28 = vmul.u32 3266489909, %v776_v16  ;;  %v777_v30 = vxor.u32 %v711_v47, %v645_v10  ;;  %v517_v39 = vshrl.u32 %v451_v27, 16  ;;  %v1113_v16 = vld [vmem:[%s1724_s5 + $0x80] sm:$0xff] }
  0x6c   : > { %v647_v31 = vmul.u32 2246822507, %v581_v18  ;;  %v778_v36 = vxor.u32 %v712_v25, %v646_v14  ;;  %v648_v37 = vmul.u32 2246822507, %v582_v26  ;;  %v452_v44 = vxor.u32 %v1754_v22, %v383_v33  ;;  %v1112_v14 = vld [vmem:[%s1724_s5 + $0x78] sm:$0xff] }
  0x6d   : > { %v973_v35 = vxor.u32 %v907_v24, %v841_v13  ;;  %v908_v40 = vshrl.u32 %v842_v28, 16  ;;  %v843_v41 = vmul.u32 3266489909, %v777_v30  ;;  %v583_v49 = vxor.u32 %v517_v39, %v451_v27 }
  0x6e   : > { %v713_v42 = vshrl.u32 %v647_v31, 13  ;;  %v844_v45 = vmul.u32 3266489909, %v778_v36  ;;  %v714_v46 = vshrl.u32 %v648_v37, 13  ;;  %v518_v57 = vshrl.u32 %v452_v44, 16 }
  0x6f   : > { %vm1039_vm8 = vcmp.ge.s32.totalorder %v973_v35, 0  ;;  %v974_v51 = vxor.u32 %v908_v40, %v842_v28  ;;  %v909_v52 = vshrl.u32 %v843_v41, 16  ;;  %v649_v56 = vmul.u32 2246822507, %v583_v49  ;;  %v1114_v35 = vld [vmem:[%s1724_s5 + $0x88] sm:$0xff] }
  0x70   : > { %v1237_v50 = vsel %vm1039_vm8, %v1814_v17, 0.0  ;;  %v779_v53 = vxor.u32 %v713_v42, %v647_v31  ;;  %v910_v54 = vshrl.u32 %v844_v45, 16  ;;  %v780_v55 = vxor.u32 %v714_v46, %v648_v37  ;;  %v1115_v46 = vld [vmem:[%s1724_s5 + $0x90] sm:$0xff] }
  0x71   : > { %1303 = vst [vmem:[%s1793_s3 + $0x40] sm:$0xff] %v1237_v50  ;;  %vm1040_vm9 = vcmp.ge.s32.totalorder %v974_v51, 0  ;;  %v975_v58 = vxor.u32 %v909_v52, %v843_v41  ;;  %v1176_v59 = vadd.f32 %v1110_v48, %v1110_v48  ;;  %v715_v17 = vshrl.u32 %v649_v56, 13 }
  0x72   : > { %v845_v23 = vmul.u32 3266489909, %v779_v53  ;;  %v1238_v61 = vsel %vm1040_vm9, %v1819_v20, 0.0  ;;  %v976_v62 = vxor.u32 %v910_v54, %v844_v45  ;;  %v846_v63 = vmul.u32 3266489909, %v780_v55 }
  0x73   : > { %1304 = vst [vmem:[%s1793_s3 + $0x48] sm:$0xff] %v1238_v61  ;;  %vm1041_vm10 = vcmp.ge.s32.totalorder %v975_v58, 0  ;;  %v584_v4 = vxor.u32 %v518_v57, %v452_v44  ;;  %v183_v5 = vadd.s32 128, %v1731_v1  ;;  %v781_v7 = vxor.u32 %v715_v17, %v649_v56 }
  0x74   : > { %v911_v0 = vshrl.u32 %v845_v23, 16  ;;  %v1239_v29 = vsel %vm1041_vm10, %v1826_v34, 0.0  ;;  %vm1042_vm11 = vcmp.ge.s32.totalorder %v976_v62, 0  ;;  %v912_v6 = vshrl.u32 %v846_v63, 16  ;;  %v1116_v62 = vld [vmem:[%s1724_s5 + $0x98] sm:$0xff] }
  0x75   : > { %1305 = vst [vmem:[%s1793_s3 + $0x50] sm:$0xff] %v1239_v29  ;;  %v1240_v20 = vsel %vm1042_vm11, %v1833_v43, 0.0  ;;  %v650_v38 = vmul.u32 2246822507, %v584_v4  ;;  %v251_v9 = vmul.u32 128, %v183_v5  ;;  %v184_v12 = vadd.s32 136, %v1731_v1 }
  0x76   : > { %v977_v32 = vxor.u32 %v911_v0, %v845_v23  ;;  %1306 = vst [vmem:[%s1793_s3 + $0x58] sm:$0xff] %v1240_v20  ;;  %v978_v10 = vxor.u32 %v912_v6, %v846_v63  ;;  %v847_v11 = vmul.u32 3266489909, %v781_v7  ;;  %v1177_v34 = vadd.f32 %v1111_v8, %v1111_v8 }
  0x77   : > { %v716_v13 = vshrl.u32 %v650_v38, 13  ;;  %v318_v21 = vadd.s32 %v1735_v3, %v251_v9  ;;  %v252_v47 = vmul.u32 128, %v184_v12  ;;  %v185_v25 = vadd.s32 144, %v1731_v1 }
  0x78   : > { %vm1043_vm12 = vcmp.ge.s32.totalorder %v977_v32, 0  ;;  %vm1044_vm13 = vcmp.ge.s32.totalorder %v978_v10, 0  ;;  %v913_v43 = vshrl.u32 %v847_v11, 16  ;;  %v1178_v27 = vadd.f32 %v1112_v14, %v1112_v14 }
  0x79   : > { %v1241_v15 = vsel %vm1043_vm12, %v1844_v60, 0.0  ;;  %v1242_v18 = vsel %vm1044_vm13, %v1176_v59, 0.0  ;;  %v782_v19 = vxor.u32 %v716_v13, %v650_v38  ;;  %v384_v24 = vadd.s32 %v318_v21, %v1733_v2 }
  0x7a   : > { %1307 = vst [vmem:[%s1793_s3 + $0x60] sm:$0xff] %v1241_v15  ;;  %1308 = vst [vmem:[%s1793_s3 + $0x68] sm:$0xff] %v1242_v18  ;;  %v979_v26 = vxor.u32 %v913_v43, %v847_v11  ;;  %v319_v28 = vadd.s32 %v1735_v3, %v252_v47  ;;  %v186_v60 = vadd.s32 152, %v1731_v1  ;;  %v1879_v33 = vadd.f32 %v1113_v16, %v1113_v16 }
  0x7b   : > { %v848_v30 = vmul.u32 3266489909, %v782_v19  ;;  %v453_v31 = vxor.u32 %v1754_v22, %v384_v24  ;;  %v253_v36 = vmul.u32 128, %v185_v25  ;;  %v187_v40 = vadd.s32 160, %v1731_v1 }
  0x7c   : > { %vm1045_vm14 = vcmp.ge.s32.totalorder %v979_v26, 0  ;;  %v385_v37 = vadd.s32 %v319_v28, %v1733_v2  ;;  %v254_v39 = vmul.u32 128, %v186_v60  ;;  %v1888_v49 = vadd.f32 %v1114_v35, %v1114_v35 }
  0x7d   : > { %v1243_v41 = vsel %vm1045_vm14, %v1177_v34, 0.0  ;;  %v914_v42 = vshrl.u32 %v848_v30, 16  ;;  %v519_v44 = vshrl.u32 %v453_v31, 16  ;;  %v320_v45 = vadd.s32 %v1735_v3, %v253_v36 }
  0x7e   : > { %1309 = vst [vmem:[%s1793_s3 + $0x70] sm:$0xff] %v1243_v41  ;;  %v454_v48 = vxor.u32 %v1754_v22, %v385_v37  ;;  %v321_v50 = vadd.s32 %v1735_v3, %v254_v39  ;;  %v255_v51 = vmul.u32 128, %v187_v40  ;;  %v188_v55 = vadd.s32 168, %v1731_v1 }
  0x7f   : > { %v980_v52 = vxor.u32 %v914_v42, %v848_v30  ;;  %v585_v53 = vxor.u32 %v519_v44, %v453_v31  ;;  %v386_v54 = vadd.s32 %v320_v45, %v1733_v2  ;;  %v1893_v57 = vadd.f32 %v1115_v46, %v1115_v46 }
  0x80   : > { %v520_v56 = vshrl.u32 %v454_v48, 16  ;;  %v387_v58 = vadd.s32 %v321_v50, %v1733_v2  ;;  %v322_v23 = vadd.s32 %v1735_v3, %v255_v51  ;;  %v256_v63 = vmul.u32 128, %v188_v55 }
  0x81   : > { %vm1046_vm15 = vcmp.ge.s32.totalorder %v980_v52, 0  ;;  %v651_v59 = vmul.u32 2246822507, %v585_v53  ;;  %v455_v61 = vxor.u32 %v1754_v22, %v386_v54  ;;  %v189_v8 = vadd.s32 176, %v1731_v1 }
  0x82   : > { %v1244_v17 = vsel %vm1046_vm15, %v1178_v27, 0.0  ;;  %v586_v0 = vxor.u32 %v520_v56, %v454_v48  ;;  %v456_v4 = vxor.u32 %v1754_v22, %v387_v58  ;;  %v388_v5 = vadd.s32 %v322_v23, %v1733_v2  ;;  %v1117_v48 = vld [vmem:[%s1724_s5 + $0xa0] sm:$0xff] }
  0x83   : > { %1310 = vst [vmem:[%s1793_s3 + $0x78] sm:$0xff] %v1244_v17  ;;  %v717_v29 = vshrl.u32 %v651_v59, 13  ;;  %v521_v6 = vshrl.u32 %v455_v61, 16  ;;  %v323_v7 = vadd.s32 %v1735_v3, %v256_v63  ;;  %v1904_v38 = vadd.f32 %v1116_v62, %v1116_v62 }
  0x84   : > { %v652_v20 = vmul.u32 2246822507, %v586_v0  ;;  %v522_v32 = vshrl.u32 %v456_v4, 16  ;;  %v457_v9 = vxor.u32 %v1754_v22, %v388_v5  ;;  %v257_v34 = vmul.u32 128, %v189_v8 }
  0x85   : > { %v783_v10 = vxor.u32 %v717_v29, %v651_v59  ;;  %v587_v11 = vxor.u32 %v521_v6, %v455_v61  ;;  %v389_v12 = vadd.s32 %v323_v7, %v1733_v2  ;;  %v190_v15 = vadd.s32 184, %v1731_v1 }
  0x86   : > { %v718_v13 = vshrl.u32 %v652_v20, 13  ;;  %v588_v14 = vxor.u32 %v522_v32, %v456_v4  ;;  %v523_v21 = vshrl.u32 %v457_v9, 16  ;;  %v324_v18 = vadd.s32 %v1735_v3, %v257_v34  ;;  %v1118_v4 = vld [vmem:[%s1724_s5 + $0xa8] sm:$0xff] }
  0x87   : > { %v849_v43 = vmul.u32 3266489909, %v783_v10  ;;  %v653_v16 = vmul.u32 2246822507, %v587_v11  ;;  %v458_v47 = vxor.u32 %v1754_v22, %v389_v12  ;;  %v1183_v0 = vadd.f32 %v1117_v48, %v1117_v48  ;;  %v1119_v12 = vld [vmem:[%s1724_s5 + $0xb0] sm:$0xff] }
  0x88   : > { %v784_v19 = vxor.u32 %v718_v13, %v652_v20  ;;  %v654_v24 = vmul.u32 2246822507, %v588_v14  ;;  %v589_v25 = vxor.u32 %v523_v21, %v457_v9  ;;  %v258_v26 = vmul.u32 128, %v190_v15 }
  0x89   : > { %v915_v27 = vshrl.u32 %v849_v43, 16  ;;  %v719_v28 = vshrl.u32 %v653_v16, 13  ;;  %v524_v60 = vshrl.u32 %v458_v47, 16  ;;  %v390_v30 = vadd.s32 %v324_v18, %v1733_v2 }
  0x8a   : > { %v850_v31 = vmul.u32 3266489909, %v784_v19  ;;  %v720_v35 = vshrl.u32 %v654_v24, 13  ;;  %v655_v36 = vmul.u32 2246822507, %v589_v25  ;;  %v325_v37 = vadd.s32 %v1735_v3, %v258_v26 }
  0x8b   : > { %v981_v39 = vxor.u32 %v915_v27, %v849_v43  ;;  %v785_v40 = vxor.u32 %v719_v28, %v653_v16  ;;  %v590_v41 = vxor.u32 %v524_v60, %v458_v47  ;;  %v459_v42 = vxor.u32 %v1754_v22, %v390_v30  ;;  %v1120_v43 = vld [vmem:[%s1724_s5 + $0xb8] sm:$0xff]  ;;  %v1121_v28 = vld [vmem:[%s1724_s5 + $0xc0] sm:$0xff] }
  0x8c   : > { %v916_v44 = vshrl.u32 %v850_v31, 16  ;;  %v786_v45 = vxor.u32 %v720_v35, %v654_v24  ;;  %v721_v46 = vshrl.u32 %v655_v36, 13  ;;  %v391_v50 = vadd.s32 %v325_v37, %v1733_v2 }
  0x8d   : > { %vm1047_vm0 = vcmp.ge.s32.totalorder %v981_v39, 0  ;;  %v851_v51 = vmul.u32 3266489909, %v785_v40  ;;  %v656_v52 = vmul.u32 2246822507, %v590_v41  ;;  %v525_v53 = vshrl.u32 %v459_v42, 16 }
  0x8e   : > { %v1245_v54 = vsel %vm1047_vm0, %v1879_v33, 0.0  ;;  %v982_v55 = vxor.u32 %v916_v44, %v850_v31  ;;  %v852_v56 = vmul.u32 3266489909, %v786_v45  ;;  %v787_v58 = vxor.u32 %v721_v46, %v655_v36  ;;  %v1122_v41 = vld [vmem:[%s1724_s5 + $0xc8] sm:$0xff] }
  0x8f   : > { %1311 = vst [vmem:[%s1793_s3 + $0x80] sm:$0xff] %v1245_v54  ;;  %v917_v23 = vshrl.u32 %v851_v51, 16  ;;  %v722_v59 = vshrl.u32 %v656_v52, 13  ;;  %v591_v61 = vxor.u32 %v525_v53, %v459_v42  ;;  %v460_v62 = vxor.u32 %v1754_v22, %v391_v50 }
  0x90   : > { %vm1048_vm1 = vcmp.ge.s32.totalorder %v982_v55, 0  ;;  %v918_v63 = vshrl.u32 %v852_v56, 16  ;;  %v853_v17 = vmul.u32 3266489909, %v787_v58  ;;  %v191_v32 = vadd.s32 192, %v1731_v1 }
  0x91   : > { %v1246_v5 = vsel %vm1048_vm1, %v1888_v49, 0.0  ;;  %v983_v29 = vxor.u32 %v917_v23, %v851_v51  ;;  %v788_v33 = vxor.u32 %v722_v59, %v656_v52  ;;  %v657_v6 = vmul.u32 2246822507, %v591_v61 }
  0x92   : > { %1312 = vst [vmem:[%s1793_s3 + $0x88] sm:$0xff] %v1246_v5  ;;  %v984_v7 = vxor.u32 %v918_v63, %v852_v56  ;;  %v919_v8 = vshrl.u32 %v853_v17, 16  ;;  %v526_v20 = vshrl.u32 %v460_v62, 16  ;;  %v1184_v10 = vadd.f32 %v1118_v4, %v1118_v4  ;;  %v1123_v56 = vld [vmem:[%s1724_s5 + $0xd0] sm:$0xff] }
  0x93   : > { %vm1049_vm2 = vcmp.ge.s32.totalorder %v983_v29, 0  ;;  %v854_v9 = vmul.u32 3266489909, %v788_v33  ;;  %v723_v11 = vshrl.u32 %v657_v6, 13  ;;  %v259_v16 = vmul.u32 128, %v191_v32 }
  0x94   : > { %v1247_v34 = vsel %vm1049_vm2, %v1893_v57, 0.0  ;;  %vm1050_vm3 = vcmp.ge.s32.totalorder %v984_v7, 0  ;;  %v985_v49 = vxor.u32 %v919_v8, %v853_v17  ;;  %v592_v13 = vxor.u32 %v526_v20, %v460_v62 }
  0x95   : > { %1313 = vst [vmem:[%s1793_s3 + $0x90] sm:$0xff] %v1247_v34  ;;  %v1248_v14 = vsel %vm1050_vm3, %v1904_v38, 0.0  ;;  %v920_v21 = vshrl.u32 %v854_v9, 16  ;;  %v789_v15 = vxor.u32 %v723_v11, %v657_v6  ;;  %v1185_v47 = vadd.f32 %v1119_v12, %v1119_v12  ;;  %v1124_v11 = vld [vmem:[%s1724_s5 + $0xd8] sm:$0xff] }
  0x96   : > { %1314 = vst [vmem:[%s1793_s3 + $0x98] sm:$0xff] %v1248_v14  ;;  %vm1051_vm4 = vcmp.ge.s32.totalorder %v985_v49, 0  ;;  %v658_v18 = vmul.u32 2246822507, %v592_v13  ;;  %v192_v19 = vadd.s32 200, %v1731_v1  ;;  %v326_v26 = vadd.s32 %v1735_v3, %v259_v16 }
  0x97   : > { %v1249_v24 = vsel %vm1051_vm4, %v1183_v0, 0.0  ;;  %v986_v57 = vxor.u32 %v920_v21, %v854_v9  ;;  %v855_v25 = vmul.u32 3266489909, %v789_v15  ;;  %v1186_v27 = vadd.f32 %v1120_v43, %v1120_v43 }
  0x98   : > { %1315 = vst [vmem:[%s1793_s3 + $0xa0] sm:$0xff] %v1249_v24  ;;  %v724_v38 = vshrl.u32 %v658_v18, 13  ;;  %v260_v60 = vmul.u32 128, %v192_v19  ;;  %v193_v30 = vadd.s32 208, %v1731_v1  ;;  %v392_v35 = vadd.s32 %v326_v26, %v1733_v2 }
  0x99   : > { %vm1052_vm5 = vcmp.ge.s32.totalorder %v986_v57, 0  ;;  %v921_v31 = vshrl.u32 %v855_v25, 16  ;;  %v194_v36 = vadd.s32 216, %v1731_v1  ;;  %v1940_v46 = vadd.f32 %v1121_v28, %v1121_v28 }
  0x9a   : > { %v1250_v37 = vsel %vm1052_vm5, %v1184_v10, 0.0  ;;  %v790_v39 = vxor.u32 %v724_v38, %v658_v18  ;;  %v327_v40 = vadd.s32 %v1735_v3, %v260_v60  ;;  %v261_v42 = vmul.u32 128, %v193_v30 }
  0x9b   : > { %1316 = vst [vmem:[%s1793_s3 + $0xa8] sm:$0xff] %v1250_v37  ;;  %v987_v44 = vxor.u32 %v921_v31, %v855_v25  ;;  %v461_v45 = vxor.u32 %v1754_v22, %v392_v35  ;;  %v262_v48 = vmul.u32 128, %v194_v36  ;;  %v195_v53 = vadd.s32 224, %v1731_v1 }
  0x9c   : > { %v856_v50 = vmul.u32 3266489909, %v790_v39  ;;  %v393_v51 = vadd.s32 %v327_v40, %v1733_v2  ;;  %v328_v52 = vadd.s32 %v1735_v3, %v261_v42  ;;  %v1945_v55 = vadd.f32 %v1122_v41, %v1122_v41 }
  0x9d   : > { %vm1053_vm6 = vcmp.ge.s32.totalorder %v987_v44, 0  ;;  %v527_v54 = vshrl.u32 %v461_v45, 16  ;;  %v329_v58 = vadd.s32 %v1735_v3, %v262_v48  ;;  %v263_v0 = vmul.u32 128, %v195_v53 }
  0x9e   : > { %v1251_v23 = vsel %vm1053_vm6, %v1185_v47, 0.0  ;;  %v922_v59 = vshrl.u32 %v856_v50, 16  ;;  %v462_v61 = vxor.u32 %v1754_v22, %v393_v51  ;;  %v394_v62 = vadd.s32 %v328_v52, %v1733_v2 }
  0x9f   : > { %1317 = vst [vmem:[%s1793_s3 + $0xb0] sm:$0xff] %v1251_v23  ;;  %v593_v63 = vxor.u32 %v527_v54, %v461_v45  ;;  %v395_v17 = vadd.s32 %v329_v58, %v1733_v2  ;;  %v196_v4 = vadd.s32 232, %v1731_v1  ;;  %v1955_v6 = vadd.f32 %v1123_v56, %v1123_v56 }
  0xa0   : > { %v988_v5 = vxor.u32 %v922_v59, %v856_v50  ;;  %v528_v29 = vshrl.u32 %v462_v61, 16  ;;  %v463_v33 = vxor.u32 %v1754_v22, %v394_v62  ;;  %v330_v20 = vadd.s32 %v1735_v3, %v263_v0 }
  0xa1   : > { %v659_v7 = vmul.u32 2246822507, %v593_v63  ;;  %v464_v8 = vxor.u32 %v1754_v22, %v395_v17  ;;  %v264_v32 = vmul.u32 128, %v196_v4  ;;  %v197_v12 = vadd.s32 240, %v1731_v1  ;;  %v1125_v63 = vld [vmem:[%s1724_s5 + $0xe0] sm:$0xff] }
  0xa2   : > { %vm1054_vm7 = vcmp.ge.s32.totalorder %v988_v5, 0  ;;  %v594_v9 = vxor.u32 %v528_v29, %v462_v61  ;;  %v529_v10 = vshrl.u32 %v463_v33, 16  ;;  %v396_v14 = vadd.s32 %v330_v20, %v1733_v2 }
  0xa3   : > { %v1252_v34 = vsel %vm1054_vm7, %v1186_v27, 0.0  ;;  %v725_v49 = vshrl.u32 %v659_v7, 13  ;;  %v530_v13 = vshrl.u32 %v464_v8, 16  ;;  %v331_v43 = vadd.s32 %v1735_v3, %v264_v32 }
  0xa4   : > { %1318 = vst [vmem:[%s1793_s3 + $0xb8] sm:$0xff] %v1252_v34  ;;  %v660_v21 = vmul.u32 2246822507, %v594_v9  ;;  %v595_v15 = vxor.u32 %v529_v10, %v463_v33  ;;  %v265_v16 = vmul.u32 128, %v197_v12  ;;  %v1964_v19 = vadd.f32 %v1124_v11, %v1124_v11 }
  0xa5   : > { %v791_v47 = vxor.u32 %v725_v49, %v659_v7  ;;  %v596_v18 = vxor.u32 %v530_v13, %v464_v8  ;;  %v465_v24 = vxor.u32 %v1754_v22, %v396_v14  ;;  %v397_v26 = vadd.s32 %v331_v43, %v1733_v2  ;;  %v1126_v43 = vld [vmem:[%s1724_s5 + $0xe8] sm:$0xff] }
  0xa6   : > { %v726_v57 = vshrl.u32 %v660_v21, 13  ;;  %v661_v25 = vmul.u32 2246822507, %v595_v15  ;;  %v332_v38 = vadd.s32 %v1735_v3, %v265_v16  ;;  %v198_v30 = vadd.s32 248, %v1731_v1 }
  0xa7   : > { %v857_v27 = vmul.u32 3266489909, %v791_v47  ;;  %v662_v28 = vmul.u32 2246822507, %v596_v18  ;;  %v531_v60 = vshrl.u32 %v465_v24, 16  ;;  %v466_v36 = vxor.u32 %v1754_v22, %v397_v26 }
  0xa8   : > { %v792_v31 = vxor.u32 %v726_v57, %v660_v21  ;;  %v727_v35 = vshrl.u32 %v661_v25, 13  ;;  %v398_v37 = vadd.s32 %v332_v38, %v1733_v2  ;;  %v266_v42 = vmul.u32 128, %v198_v30 }
  0xa9   : > { %v923_v39 = vshrl.u32 %v857_v27, 16  ;;  %v728_v40 = vshrl.u32 %v662_v28, 13  ;;  %v597_v41 = vxor.u32 %v531_v60, %v465_v24  ;;  %v532_v48 = vshrl.u32 %v466_v36, 16 }
  0xaa   : > { %v858_v44 = vmul.u32 3266489909, %v792_v31  ;;  %v793_v45 = vxor.u32 %v727_v35, %v661_v25  ;;  %v467_v50 = vxor.u32 %v1754_v22, %v398_v37  ;;  %v333_v54 = vadd.s32 %v1735_v3, %v266_v42  ;;  %v1128_v42 = vld [vmem:[%s1724_s5 + $0xf8] sm:$0xff] }
  0xab   : > { %v989_v51 = vxor.u32 %v923_v39, %v857_v27  ;;  %v794_v52 = vxor.u32 %v728_v40, %v662_v28  ;;  %v663_v53 = vmul.u32 2246822507, %v597_v41  ;;  %v598_v23 = vxor.u32 %v532_v48, %v466_v36  ;;  %v1127_v27 = vld [vmem:[%s1724_s5 + $0xf0] sm:$0xff] }
  0xac   : > { %v924_v56 = vshrl.u32 %v858_v44, 16  ;;  %v859_v58 = vmul.u32 3266489909, %v793_v45  ;;  %v533_v59 = vshrl.u32 %v467_v50, 16  ;;  %v399_v17 = vadd.s32 %v333_v54, %v1733_v2 }
  0xad   : > { %vm1055_vm8 = vcmp.ge.s32.totalorder %v989_v51, 0  ;;  %v860_v61 = vmul.u32 3266489909, %v794_v52  ;;  %v729_v62 = vshrl.u32 %v663_v53, 13  ;;  %v664_v29 = vmul.u32 2246822507, %v598_v23 }
  0xae   : > { %v1253_v0 = vsel %vm1055_vm8, %v1940_v46, 0.0  ;;  %v990_v4 = vxor.u32 %v924_v56, %v858_v44  ;;  %v925_v5 = vshrl.u32 %v859_v58, 16  ;;  %v599_v8 = vxor.u32 %v533_v59, %v467_v50 }
  0xaf   : > { %1319 = vst [vmem:[%s1793_s3 + $0xc0] sm:$0xff] %v1253_v0  ;;  %v926_v33 = vshrl.u32 %v860_v61, 16  ;;  %v795_v7 = vxor.u32 %v729_v62, %v663_v53  ;;  %v468_v20 = vxor.u32 %v1754_v22, %v399_v17  ;;  %v1191_v9 = vadd.f32 %v1125_v63, %v1125_v63 }
  0xb0   : > { %vm1056_vm9 = vcmp.ge.s32.totalorder %v990_v4, 0  ;;  %v991_v32 = vxor.u32 %v925_v5, %v859_v58  ;;  %v730_v10 = vshrl.u32 %v664_v29, 13  ;;  %v665_v34 = vmul.u32 2246822507, %v599_v8 }
  0xb1   : > { %v1254_v11 = vsel %vm1056_vm9, %v1945_v55, 0.0  ;;  %v992_v12 = vxor.u32 %v926_v33, %v860_v61  ;;  %v861_v46 = vmul.u32 3266489909, %v795_v7  ;;  %v534_v13 = vshrl.u32 %v468_v20, 16  ;;  %v1129_v61 = vld [vmem:[%s1724_s5 + $0x100] sm:$0xff]  ;;  %v1130_v33 = vld [vmem:[%s1724_s5 + $0x108] sm:$0xff] }
  0xb2   : > { %1320 = vst [vmem:[%s1793_s3 + $0xc8] sm:$0xff] %v1254_v11  ;;  %vm1057_vm10 = vcmp.ge.s32.totalorder %v991_v32, 0  ;;  %v796_v49 = vxor.u32 %v730_v10, %v664_v29  ;;  %v199_v14 = vadd.s32 256, %v1731_v1  ;;  %v731_v16 = vshrl.u32 %v665_v34, 13 }
  0xb3   : > { %v1255_v21 = vsel %vm1057_vm10, %v1955_v6, 0.0  ;;  %vm1058_vm11 = vcmp.ge.s32.totalorder %v992_v12, 0  ;;  %v927_v15 = vshrl.u32 %v861_v46, 16  ;;  %v600_v18 = vxor.u32 %v534_v13, %v468_v20 }
  0xb4   : > { %1321 = vst [vmem:[%s1793_s3 + $0xd0] sm:$0xff] %v1255_v21  ;;  %v1256_v55 = vsel %vm1058_vm11, %v1964_v19, 0.0  ;;  %v862_v47 = vmul.u32 3266489909, %v796_v49  ;;  %v267_v24 = vmul.u32 128, %v199_v14  ;;  %v797_v25 = vxor.u32 %v731_v16, %v665_v34 }
  0xb5   : > { %1322 = vst [vmem:[%s1793_s3 + $0xd8] sm:$0xff] %v1256_v55  ;;  %v993_v57 = vxor.u32 %v927_v15, %v861_v46  ;;  %v200_v26 = vadd.s32 264, %v1731_v1  ;;  %v1192_v6 = vadd.f32 %v1126_v43, %v1126_v43  ;;  %v666_v28 = vmul.u32 2246822507, %v600_v18  ;;  %v1131_v15 = vld [vmem:[%s1724_s5 + $0x110] sm:$0xff] }
  0xb6   : > { %v928_v38 = vshrl.u32 %v862_v47, 16  ;;  %v334_v60 = vadd.s32 %v1735_v3, %v267_v24  ;;  %v863_v30 = vmul.u32 3266489909, %v797_v25  ;;  %v201_v19 = vadd.s32 272, %v1731_v1 }
  0xb7   : > { %vm1059_vm12 = vcmp.ge.s32.totalorder %v993_v57, 0  ;;  %v268_v31 = vmul.u32 128, %v200_v26  ;;  %v732_v37 = vshrl.u32 %v666_v28, 13  ;;  %v1193_v41 = vadd.f32 %v1127_v27, %v1127_v27 }
  0xb8   : > { %v1257_v35 = vsel %vm1059_vm12, %v1191_v9, 0.0  ;;  %v994_v36 = vxor.u32 %v928_v38, %v862_v47  ;;  %v400_v39 = vadd.s32 %v334_v60, %v1733_v2  ;;  %v929_v40 = vshrl.u32 %v863_v30, 16 }
  0xb9   : > { %1323 = vst [vmem:[%s1793_s3 + $0xe0] sm:$0xff] %v1257_v35  ;;  %v335_v44 = vadd.s32 %v1735_v3, %v268_v31  ;;  %v269_v45 = vmul.u32 128, %v201_v19  ;;  %v798_v48 = vxor.u32 %v732_v37, %v666_v28  ;;  %v202_v51 = vadd.s32 280, %v1731_v1 }
  0xba   : > { %vm1060_vm13 = vcmp.ge.s32.totalorder %v994_v36, 0  ;;  %v469_v50 = vxor.u32 %v1754_v22, %v400_v39  ;;  %v995_v53 = vxor.u32 %v929_v40, %v863_v30  ;;  %v1194_v23 = vadd.f32 %v1128_v42, %v1128_v42 }
  0xbb   : > { %v1258_v52 = vsel %vm1060_vm13, %v1192_v6, 0.0  ;;  %v401_v54 = vadd.s32 %v335_v44, %v1733_v2  ;;  %v336_v56 = vadd.s32 %v1735_v3, %v269_v45  ;;  %v864_v58 = vmul.u32 3266489909, %v798_v48 }
  0xbc   : > { %1324 = vst [vmem:[%s1793_s3 + $0xe8] sm:$0xff] %v1258_v52  ;;  %v535_v59 = vshrl.u32 %v469_v50, 16  ;;  %v270_v62 = vmul.u32 128, %v202_v51  ;;  %vm1061_vm14 = vcmp.ge.s32.totalorder %v995_v53, 0  ;;  %v203_v0 = vadd.s32 288, %v1731_v1 }
  0xbd   : > { %v470_v63 = vxor.u32 %v1754_v22, %v401_v54  ;;  %v402_v17 = vadd.s32 %v336_v56, %v1733_v2  ;;  %v1259_v4 = vsel %vm1061_vm14, %v1193_v41, 0.0  ;;  %v930_v5 = vshrl.u32 %v864_v58, 16 }
  0xbe   : > { %v601_v29 = vxor.u32 %v535_v59, %v469_v50  ;;  %v337_v7 = vadd.s32 %v1735_v3, %v270_v62  ;;  %1325 = vst [vmem:[%s1793_s3 + $0xf0] sm:$0xff] %v1259_v4  ;;  %v1195_v8 = vadd.f32 %v1129_v61, %v1129_v61  ;;  %v271_v9 = vmul.u32 128, %v203_v0 }
  0xbf   : > { %v536_v20 = vshrl.u32 %v470_v63, 16  ;;  %v471_v32 = vxor.u32 %v1754_v22, %v402_v17  ;;  %v996_v10 = vxor.u32 %v930_v5, %v864_v58  ;;  %v204_v46 = vadd.s32 296, %v1731_v1  ;;  %v1132_v17 = vld [vmem:[%s1724_s5 + $0x118] sm:$0xff] }
  0xc0   : > { %v667_v11 = vmul.u32 2246822507, %v601_v29  ;;  %v403_v12 = vadd.s32 %v337_v7, %v1733_v2  ;;  %v2010_v49 = vadd.f32 %v1130_v33, %v1130_v33  ;;  %v338_v14 = vadd.s32 %v1735_v3, %v271_v9 }
  0xc1   : > { %v602_v34 = vxor.u32 %v536_v20, %v470_v63  ;;  %v537_v13 = vshrl.u32 %v471_v32, 16  ;;  %vm1062_vm15 = vcmp.ge.s32.totalorder %v996_v10, 0  ;;  %v272_v16 = vmul.u32 128, %v204_v46 }
  0xc2   : > { %v733_v21 = vshrl.u32 %v667_v11, 13  ;;  %v472_v43 = vxor.u32 %v1754_v22, %v403_v12  ;;  %v1260_v55 = vsel %vm1062_vm15, %v1194_v23, 0.0  ;;  %v404_v24 = vadd.s32 %v338_v14, %v1733_v2 }
  0xc3   : > { %v668_v47 = vmul.u32 2246822507, %v602_v34  ;;  %v603_v18 = vxor.u32 %v537_v13, %v471_v32  ;;  %1326 = vst [vmem:[%s1793_s3 + $0xf8] sm:$0xff] %v1260_v55  ;;  %v339_v26 = vadd.s32 %v1735_v3, %v272_v16  ;;  %v205_v38 = vadd.s32 304, %v1731_v1 }
  0xc4   : > { %v799_v57 = vxor.u32 %v733_v21, %v667_v11  ;;  %v538_v25 = vshrl.u32 %v472_v43, 16  ;;  %v1197_v28 = vadd.f32 %v1131_v15, %v1131_v15  ;;  %v473_v60 = vxor.u32 %v1754_v22, %v404_v24 }
  0xc5   : > { %v734_v6 = vshrl.u32 %v668_v47, 13  ;;  %v669_v27 = vmul.u32 2246822507, %v603_v18  ;;  %v405_v19 = vadd.s32 %v339_v26, %v1733_v2  ;;  %v273_v35 = vmul.u32 128, %v205_v38 }
  0xc6   : > { %v865_v30 = vmul.u32 3266489909, %v799_v57  ;;  %v604_v31 = vxor.u32 %v538_v25, %v472_v43  ;;  %v539_v39 = vshrl.u32 %v473_v60, 16  ;;  %v206_v40 = vadd.s32 312, %v1731_v1  ;;  %v1134_v25 = vld [vmem:[%s1724_s5 + $0x128] sm:$0xff] }
  0xc7   : > { %v800_v36 = vxor.u32 %v734_v6, %v668_v47  ;;  %v735_v37 = vshrl.u32 %v669_v27, 13  ;;  %v474_v44 = vxor.u32 %v1754_v22, %v405_v19  ;;  %v340_v45 = vadd.s32 %v1735_v3, %v273_v35 }
  0xc8   : > { %v931_v41 = vshrl.u32 %v865_v30, 16  ;;  %v670_v42 = vmul.u32 2246822507, %v604_v31  ;;  %v605_v51 = vxor.u32 %v539_v39, %v473_v60  ;;  %v274_v52 = vmul.u32 128, %v206_v40  ;;  %v1135_v39 = vld [vmem:[%s1724_s5 + $0x130] sm:$0xff] }
  0xc9   : > { %v866_v48 = vmul.u32 3266489909, %v800_v36  ;;  %v801_v50 = vxor.u32 %v735_v37, %v669_v27  ;;  %v540_v56 = vshrl.u32 %v474_v44, 16  ;;  %v406_v58 = vadd.s32 %v340_v45, %v1733_v2 }
  0xca   : > { %v997_v53 = vxor.u32 %v931_v41, %v865_v30  ;;  %v736_v54 = vshrl.u32 %v670_v42, 13  ;;  %v671_v61 = vmul.u32 2246822507, %v605_v51  ;;  %v341_v62 = vadd.s32 %v1735_v3, %v274_v52 }
  0xcb   : > { %v932_v23 = vshrl.u32 %v866_v48, 16  ;;  %v867_v59 = vmul.u32 3266489909, %v801_v50  ;;  %v606_v0 = vxor.u32 %v540_v56, %v474_v44  ;;  %v475_v4 = vxor.u32 %v1754_v22, %v406_v58 }
  0xcc   : > { %vm1063_vm0 = vcmp.ge.s32.totalorder %v997_v53, 0  ;;  %v802_v63 = vxor.u32 %v736_v54, %v670_v42  ;;  %v737_v7 = vshrl.u32 %v671_v61, 13  ;;  %v407_v10 = vadd.s32 %v341_v62, %v1733_v2  ;;  %v1136_v54 = vld [vmem:[%s1724_s5 + $0x138] sm:$0xff] }
  0xcd   : > { %v1261_v5 = vsel %vm1063_vm0, %v1195_v8, 0.0  ;;  %v998_v29 = vxor.u32 %v932_v23, %v866_v48  ;;  %v933_v33 = vshrl.u32 %v867_v59, 16  ;;  %v672_v32 = vmul.u32 2246822507, %v606_v0  ;;  %v1133_v8 = vld [vmem:[%s1724_s5 + $0x120] sm:$0xff] }
  0xce   : > { %1327 = vst [vmem:[%s1793_s3 + $0x100] sm:$0xff] %v1261_v5  ;;  %v868_v20 = vmul.u32 3266489909, %v802_v63  ;;  %v541_v9 = vshrl.u32 %v475_v4, 16  ;;  %v1198_v12 = vadd.f32 %v1132_v17, %v1132_v17  ;;  %v803_v46 = vxor.u32 %v737_v7, %v671_v61  ;;  %v1137_v0 = vld [vmem:[%s1724_s5 + $0x140] sm:$0xff] }
  0xcf   : > { %vm1064_vm1 = vcmp.ge.s32.totalorder %v998_v29, 0  ;;  %v999_v11 = vxor.u32 %v933_v33, %v867_v59  ;;  %v738_v14 = vshrl.u32 %v672_v32, 13  ;;  %v476_v43 = vxor.u32 %v1754_v22, %v407_v10 }
  0xd0   : > { %v1262_v34 = vsel %vm1064_vm1, %v2010_v49, 0.0  ;;  %v934_v13 = vshrl.u32 %v868_v20, 16  ;;  %v607_v21 = vxor.u32 %v541_v9, %v475_v4  ;;  %v869_v15 = vmul.u32 3266489909, %v803_v46  ;;  %v1138_v46 = vld [vmem:[%s1724_s5 + $0x148] sm:$0xff] }
  0xd1   : > { %1328 = vst [vmem:[%s1793_s3 + $0x108] sm:$0xff] %v1262_v34  ;;  %vm1065_vm2 = vcmp.ge.s32.totalorder %v999_v11, 0  ;;  %v207_v16 = vadd.s32 320, %v1731_v1  ;;  %v804_v18 = vxor.u32 %v738_v14, %v672_v32  ;;  %v1199_v49 = vadd.f32 %v1133_v8, %v1133_v8 }
  0xd2   : > { %v1263_v55 = vsel %vm1065_vm2, %v1197_v28, 0.0  ;;  %v1000_v47 = vxor.u32 %v934_v13, %v868_v20  ;;  %v673_v24 = vmul.u32 2246822507, %v607_v21  ;;  %v935_v57 = vshrl.u32 %v869_v15, 16 }
  0xd3   : > { %1329 = vst [vmem:[%s1793_s3 + $0x110] sm:$0xff] %v1263_v55  ;;  %v542_v26 = vshrl.u32 %v476_v43, 16  ;;  %v275_v38 = vmul.u32 128, %v207_v16  ;;  %v870_v6 = vmul.u32 3266489909, %v804_v18  ;;  %v208_v60 = vadd.s32 328, %v1731_v1 }
  0xd4   : > { %vm1066_vm3 = vcmp.ge.s32.totalorder %v1000_v47, 0  ;;  %v739_v27 = vshrl.u32 %v673_v24, 13  ;;  %v1001_v31 = vxor.u32 %v935_v57, %v869_v15  ;;  %v1200_v36 = vadd.f32 %v1134_v25, %v1134_v25  ;;  %v1139_v25 = vld [vmem:[%s1724_s5 + $0x150] sm:$0xff] }
  0xd5   : > { %v1264_v30 = vsel %vm1066_vm3, %v1198_v12, 0.0  ;;  %v608_v19 = vxor.u32 %v542_v26, %v476_v43  ;;  %v342_v28 = vadd.s32 %v1735_v3, %v275_v38  ;;  %v936_v35 = vshrl.u32 %v870_v6, 16 }
  0xd6   : > { %1330 = vst [vmem:[%s1793_s3 + $0x118] sm:$0xff] %v1264_v30  ;;  %v805_v37 = vxor.u32 %v739_v27, %v673_v24  ;;  %v276_v40 = vmul.u32 128, %v208_v60  ;;  %vm1067_vm4 = vcmp.ge.s32.totalorder %v1001_v31, 0  ;;  %v209_v44 = vadd.s32 336, %v1731_v1 }
  0xd7   : > { %v674_v41 = vmul.u32 2246822507, %v608_v19  ;;  %v408_v42 = vadd.s32 %v342_v28, %v1733_v2  ;;  %v1265_v45 = vsel %vm1067_vm4, %v1199_v49, 0.0  ;;  %v1002_v48 = vxor.u32 %v936_v35, %v870_v6 }
  0xd8   : > { %v871_v50 = vmul.u32 3266489909, %v805_v37  ;;  %v343_v51 = vadd.s32 %v1735_v3, %v276_v40  ;;  %1331 = vst [vmem:[%s1793_s3 + $0x120] sm:$0xff] %v1265_v45  ;;  %v1201_v52 = vadd.f32 %v1135_v39, %v1135_v39  ;;  %v277_v58 = vmul.u32 128, %v209_v44 }
  0xd9   : > { %v740_v53 = vshrl.u32 %v674_v41, 13  ;;  %v477_v56 = vxor.u32 %v1754_v22, %v408_v42  ;;  %vm1068_vm5 = vcmp.ge.s32.totalorder %v1002_v48, 0  ;;  %v210_v61 = vadd.s32 344, %v1731_v1 }
  0xda   : > { %v937_v23 = vshrl.u32 %v871_v50, 16  ;;  %v409_v59 = vadd.s32 %v343_v51, %v1733_v2  ;;  %v1266_v62 = vsel %vm1068_vm5, %v1200_v36, 0.0  ;;  %v344_v4 = vadd.s32 %v1735_v3, %v277_v58 }
  0xdb   : > { %v806_v63 = vxor.u32 %v740_v53, %v674_v41  ;;  %v543_v17 = vshrl.u32 %v477_v56, 16  ;;  %1332 = vst [vmem:[%s1793_s3 + $0x128] sm:$0xff] %v1266_v62  ;;  %v1202_v29 = vadd.f32 %v1136_v54, %v1136_v54  ;;  %v278_v7 = vmul.u32 128, %v210_v61 }
  0xdc   : > { %v1003_v5 = vxor.u32 %v937_v23, %v871_v50  ;;  %v478_v33 = vxor.u32 %v1754_v22, %v409_v59  ;;  %v410_v9 = vadd.s32 %v344_v4, %v1733_v2  ;;  %v211_v10 = vadd.s32 352, %v1731_v1 }
  0xdd   : > { %v872_v20 = vmul.u32 3266489909, %v806_v63  ;;  %v609_v32 = vxor.u32 %v543_v17, %v477_v56  ;;  %v1203_v11 = vadd.f32 %v1137_v0, %v1137_v0  ;;  %v345_v34 = vadd.s32 %v1735_v3, %v278_v7 }
  0xde   : > { %vm1069_vm6 = vcmp.ge.s32.totalorder %v1003_v5, 0  ;;  %v544_v12 = vshrl.u32 %v478_v33, 16  ;;  %v479_v21 = vxor.u32 %v1754_v22, %v410_v9  ;;  %v279_v16 = vmul.u32 128, %v211_v10 }
  0xdf   : > { %v1267_v13 = vsel %vm1069_vm6, %v1201_v52, 0.0  ;;  %v938_v8 = vshrl.u32 %v872_v20, 16  ;;  %v675_v14 = vmul.u32 2246822507, %v609_v32  ;;  %v411_v43 = vadd.s32 %v345_v34, %v1733_v2 }
  0xe0   : > { %1333 = vst [vmem:[%s1793_s3 + $0x130] sm:$0xff] %v1267_v13  ;;  %v610_v15 = vxor.u32 %v544_v12, %v478_v33  ;;  %v212_v55 = vadd.s32 360, %v1731_v1  ;;  %v1204_v24 = vadd.f32 %v1138_v46, %v1138_v46  ;;  %v545_v57 = vshrl.u32 %v479_v21, 16 }
  0xe1   : > { %v1004_v47 = vxor.u32 %v938_v8, %v872_v20  ;;  %v741_v18 = vshrl.u32 %v675_v14, 13  ;;  %v480_v26 = vxor.u32 %v1754_v22, %v411_v43  ;;  %v346_v38 = vadd.s32 %v1735_v3, %v279_v16 }
  0xe2   : > { %v676_v49 = vmul.u32 2246822507, %v610_v15  ;;  %v280_v6 = vmul.u32 128, %v212_v55  ;;  %v611_v60 = vxor.u32 %v545_v57, %v479_v21  ;;  %v213_v30 = vadd.s32 368, %v1731_v1  ;;  %v1141_v15 = vld [vmem:[%s1724_s5 + $0x160] sm:$0xff] }
  0xe3   : > { %vm1070_vm7 = vcmp.ge.s32.totalorder %v1004_v47, 0  ;;  %v807_v27 = vxor.u32 %v741_v18, %v675_v14  ;;  %v546_v28 = vshrl.u32 %v480_v26, 16  ;;  %v412_v35 = vadd.s32 %v346_v38, %v1733_v2  ;;  %v1142_v38 = vld [vmem:[%s1724_s5 + $0x168] sm:$0xff] }
  0xe4   : > { %v1268_v31 = vsel %vm1070_vm7, %v1202_v29, 0.0  ;;  %v742_v19 = vshrl.u32 %v676_v49, 13  ;;  %v677_v37 = vmul.u32 2246822507, %v611_v60  ;;  %v1205_v39 = vadd.f32 %v1139_v25, %v1139_v25  ;;  %v1140_v29 = vld [vmem:[%s1724_s5 + $0x158] sm:$0xff] }
  0xe5   : > { %1334 = vst [vmem:[%s1793_s3 + $0x138] sm:$0xff] %v1268_v31  ;;  %v873_v36 = vmul.u32 3266489909, %v807_v27  ;;  %v347_v40 = vadd.s32 %v1735_v3, %v280_v6  ;;  %v612_v42 = vxor.u32 %v546_v28, %v480_v26  ;;  %v481_v44 = vxor.u32 %v1754_v22, %v412_v35 }
  0xe6   : > { %v808_v41 = vxor.u32 %v742_v19, %v676_v49  ;;  %v281_v45 = vmul.u32 128, %v213_v30  ;;  %v743_v50 = vshrl.u32 %v677_v37, 13  ;;  %v214_v52 = vadd.s32 376, %v1731_v1 }
  0xe7   : > { %v939_v48 = vshrl.u32 %v873_v36, 16  ;;  %v413_v51 = vadd.s32 %v347_v40, %v1733_v2  ;;  %v678_v54 = vmul.u32 2246822507, %v612_v42  ;;  %v547_v56 = vshrl.u32 %v481_v44, 16  ;;  %v1143_v40 = vld [vmem:[%s1724_s5 + $0x170] sm:$0xff] }
  0xe8   : > { %v874_v53 = vmul.u32 3266489909, %v808_v41  ;;  %v348_v58 = vadd.s32 %v1735_v3, %v281_v45  ;;  %v809_v59 = vxor.u32 %v743_v50, %v677_v37  ;;  %v282_v62 = vmul.u32 128, %v214_v52 }
  0xe9   : > { %v1005_v23 = vxor.u32 %v939_v48, %v873_v36  ;;  %v482_v61 = vxor.u32 %v1754_v22, %v413_v51  ;;  %v744_v17 = vshrl.u32 %v678_v54, 13  ;;  %v613_v0 = vxor.u32 %v547_v56, %v481_v44 }
  0xea   : > { %v940_v63 = vshrl.u32 %v874_v53, 16  ;;  %v414_v4 = vadd.s32 %v348_v58, %v1733_v2  ;;  %v875_v5 = vmul.u32 3266489909, %v809_v59  ;;  %v349_v7 = vadd.s32 %v1735_v3, %v282_v62  ;;  %v1144_v59 = vld [vmem:[%s1724_s5 + $0x178] sm:$0xff] }
  0xeb   : > { %vm1071_vm8 = vcmp.ge.s32.totalorder %v1005_v23, 0  ;;  %v548_v33 = vshrl.u32 %v482_v61, 16  ;;  %v810_v9 = vxor.u32 %v744_v17, %v678_v54  ;;  %v679_v10 = vmul.u32 2246822507, %v613_v0 }
  0xec   : > { %v1269_v20 = vsel %vm1071_vm8, %v1203_v11, 0.0  ;;  %v1006_v32 = vxor.u32 %v940_v63, %v874_v53  ;;  %v941_v12 = vshrl.u32 %v875_v5, 16  ;;  %v483_v34 = vxor.u32 %v1754_v22, %v414_v4 }
  0xed   : > { %1335 = vst [vmem:[%s1793_s3 + $0x140] sm:$0xff] %v1269_v20  ;;  %v614_v46 = vxor.u32 %v548_v33, %v482_v61  ;;  %v415_v13 = vadd.s32 %v349_v7, %v1733_v2  ;;  %v876_v8 = vmul.u32 3266489909, %v810_v9  ;;  %v1206_v14 = vadd.f32 %v1140_v29, %v1140_v29 }
  0xee   : > { %vm1072_vm9 = vcmp.ge.s32.totalorder %v1006_v32, 0  ;;  %v745_v21 = vshrl.u32 %v679_v10, 13  ;;  %v1007_v16 = vxor.u32 %v941_v12, %v875_v5  ;;  %v549_v55 = vshrl.u32 %v483_v34, 16 }
  0xef   : > { %v1270_v43 = vsel %vm1072_vm9, %v1204_v24, 0.0  ;;  %v680_v11 = vmul.u32 2246822507, %v614_v46  ;;  %v942_v47 = vshrl.u32 %v876_v8, 16  ;;  %v484_v57 = vxor.u32 %v1754_v22, %v415_v13 }
  0xf0   : > { %1336 = vst [vmem:[%s1793_s3 + $0x148] sm:$0xff] %v1270_v43  ;;  %v811_v18 = vxor.u32 %v745_v21, %v679_v10  ;;  %v215_v49 = vadd.s32 384, %v1731_v1  ;;  %vm1073_vm10 = vcmp.ge.s32.totalorder %v1007_v16, 0  ;;  %v1207_v25 = vadd.f32 %v1141_v15, %v1141_v15  ;;  %v1145_v10 = vld [vmem:[%s1724_s5 + $0x180] sm:$0xff] }
  0xf1   : > { %v746_v26 = vshrl.u32 %v680_v11, 13  ;;  %v615_v6 = vxor.u32 %v549_v55, %v483_v34  ;;  %v1271_v27 = vsel %vm1073_vm10, %v1205_v39, 0.0  ;;  %v1008_v60 = vxor.u32 %v942_v47, %v876_v8 }
  0xf2   : > { %v877_v24 = vmul.u32 3266489909, %v811_v18  ;;  %v550_v30 = vshrl.u32 %v484_v57, 16  ;;  %1337 = vst [vmem:[%s1793_s3 + $0x150] sm:$0xff] %v1271_v27  ;;  %v283_v28 = vmul.u32 128, %v215_v49  ;;  %v216_v35 = vadd.s32 392, %v1731_v1 }
  0xf3   : > { %v812_v31 = vxor.u32 %v746_v26, %v680_v11  ;;  %v681_v19 = vmul.u32 2246822507, %v615_v6  ;;  %vm1074_vm11 = vcmp.ge.s32.totalorder %v1008_v60, 0  ;;  %v1208_v37 = vadd.f32 %v1142_v38, %v1142_v38  ;;  %v1146_v18 = vld [vmem:[%s1724_s5 + $0x188] sm:$0xff] }
  0xf4   : > { %v943_v36 = vshrl.u32 %v877_v24, 16  ;;  %v616_v41 = vxor.u32 %v550_v30, %v484_v57  ;;  %v1272_v42 = vsel %vm1074_vm11, %v1206_v14, 0.0  ;;  %v350_v39 = vadd.s32 %v1735_v3, %v283_v28 }
  0xf5   : > { %v878_v44 = vmul.u32 3266489909, %v812_v31  ;;  %v747_v45 = vshrl.u32 %v681_v19, 13  ;;  %1338 = vst [vmem:[%s1793_s3 + $0x158] sm:$0xff] %v1272_v42  ;;  %v284_v51 = vmul.u32 128, %v216_v35  ;;  %v217_v52 = vadd.s32 400, %v1731_v1 }
  0xf6   : > { %v1009_v48 = vxor.u32 %v943_v36, %v877_v24  ;;  %v682_v50 = vmul.u32 2246822507, %v616_v41  ;;  %v1209_v56 = vadd.f32 %v1143_v40, %v1143_v40  ;;  %v416_v58 = vadd.s32 %v350_v39, %v1733_v2  ;;  %v1147_v35 = vld [vmem:[%s1724_s5 + $0x190] sm:$0xff] }
  0xf7   : > { %v944_v53 = vshrl.u32 %v878_v44, 16  ;;  %v813_v54 = vxor.u32 %v747_v45, %v681_v19  ;;  %v351_v61 = vadd.s32 %v1735_v3, %v284_v51  ;;  %v285_v62 = vmul.u32 128, %v217_v52 }
  0xf8   : > { %vm1075_vm12 = vcmp.ge.s32.totalorder %v1009_v48, 0  ;;  %v748_v23 = vshrl.u32 %v682_v50, 13  ;;  %v485_v4 = vxor.u32 %v1754_v22, %v416_v58  ;;  %v218_v7 = vadd.s32 408, %v1731_v1 }
  0xf9   : > { %v1273_v63 = vsel %vm1075_vm12, %v1207_v25, 0.0  ;;  %v1010_v17 = vxor.u32 %v944_v53, %v878_v44  ;;  %v879_v0 = vmul.u32 3266489909, %v813_v54  ;;  %v417_v29 = vadd.s32 %v351_v61, %v1733_v2 }
  0xfa   : > { %1339 = vst [vmem:[%s1793_s3 + $0x160] sm:$0xff] %v1273_v63  ;;  %v814_v5 = vxor.u32 %v748_v23, %v682_v50  ;;  %v352_v33 = vadd.s32 %v1735_v3, %v285_v62  ;;  %v1210_v32 = vadd.f32 %v1144_v59, %v1144_v59  ;;  %v551_v9 = vshrl.u32 %v485_v4, 16 }
  0xfb   : > { %vm1076_vm13 = vcmp.ge.s32.totalorder %v1010_v17, 0  ;;  %v945_v20 = vshrl.u32 %v879_v0, 16  ;;  %v486_v34 = vxor.u32 %v1754_v22, %v417_v29  ;;  %v286_v21 = vmul.u32 128, %v218_v7 }
  0xfc   : > { %v1274_v12 = vsel %vm1076_vm13, %v1208_v37, 0.0  ;;  %v880_v46 = vmul.u32 3266489909, %v814_v5  ;;  %v418_v13 = vadd.s32 %v352_v33, %v1733_v2  ;;  %v617_v14 = vxor.u32 %v551_v9, %v485_v4 }
  0xfd   : > { %1340 = vst [vmem:[%s1793_s3 + $0x168] sm:$0xff] %v1274_v12  ;;  %v1011_v8 = vxor.u32 %v945_v20, %v879_v0  ;;  %v219_v15 = vadd.s32 416, %v1731_v1  ;;  %v1211_v16 = vadd.f32 %v1145_v10, %v1145_v10  ;;  %v552_v11 = vshrl.u32 %v486_v34, 16 }
  0xfe   : > { %v946_v43 = vshrl.u32 %v880_v46, 16  ;;  %v487_v55 = vxor.u32 %v1754_v22, %v418_v13  ;;  %v683_v47 = vmul.u32 2246822507, %v617_v14  ;;  %v353_v57 = vadd.s32 %v1735_v3, %v286_v21 }
  0xff   : > { %vm1077_vm14 = vcmp.ge.s32.totalorder %v1011_v8, 0  ;;  %v287_v49 = vmul.u32 128, %v219_v15  ;;  %v618_v38 = vxor.u32 %v552_v11, %v486_v34  ;;  %v220_v30 = vadd.s32 424, %v1731_v1 }
 0x100   : > { %v1275_v25 = vsel %vm1077_vm14, %v1209_v56, 0.0  ;;  %v1012_v26 = vxor.u32 %v946_v43, %v880_v46  ;;  %v553_v6 = vshrl.u32 %v487_v55, 16  ;;  %v749_v27 = vshrl.u32 %v683_v47, 13 }
 0x101   : > { %1341 = vst [vmem:[%s1793_s3 + $0x170] sm:$0xff] %v1275_v25  ;;  %v419_v60 = vadd.s32 %v353_v57, %v1733_v2  ;;  %v354_v24 = vadd.s32 %v1735_v3, %v287_v49  ;;  %v684_v31 = vmul.u32 2246822507, %v618_v38  ;;  %v1212_v19 = vadd.f32 %v1146_v18, %v1146_v18  ;;  %v1148_v25 = vld [vmem:[%s1724_s5 + $0x198] sm:$0xff] }
 0x102   : > { %vm1078_vm15 = vcmp.ge.s32.totalorder %v1012_v26, 0  ;;  %v619_v28 = vxor.u32 %v553_v6, %v487_v55  ;;  %v815_v37 = vxor.u32 %v749_v27, %v683_v47  ;;  %v288_v45 = vmul.u32 128, %v220_v30 }
 0x103   : > { %v1276_v36 = vsel %vm1078_vm15, %v1210_v32, 0.0  ;;  %v488_v40 = vxor.u32 %v1754_v22, %v419_v60  ;;  %v420_v41 = vadd.s32 %v354_v24, %v1733_v2  ;;  %v750_v42 = vshrl.u32 %v684_v31, 13 }
 0x104   : > { %1342 = vst [vmem:[%s1793_s3 + $0x178] sm:$0xff] %v1276_v36  ;;  %v685_v44 = vmul.u32 2246822507, %v619_v28  ;;  %v221_v39 = vadd.s32 432, %v1731_v1  ;;  %v881_v48 = vmul.u32 3266489909, %v815_v37  ;;  %v1213_v50 = vadd.f32 %v1147_v35, %v1147_v35 }
 0x105   : > { %v554_v51 = vshrl.u32 %v488_v40, 16  ;;  %v489_v52 = vxor.u32 %v1754_v22, %v420_v41  ;;  %v816_v53 = vxor.u32 %v750_v42, %v684_v31  ;;  %v355_v56 = vadd.s32 %v1735_v3, %v288_v45  ;;  %v1149_v31 = vld [vmem:[%s1724_s5 + $0x1a0] sm:$0xff] }
 0x106   : > { %v751_v54 = vshrl.u32 %v685_v44, 13  ;;  %v289_v58 = vmul.u32 128, %v221_v39  ;;  %v947_v23 = vshrl.u32 %v881_v48, 16  ;;  %v222_v62 = vadd.s32 440, %v1731_v1 }
 0x107   : > { %v620_v59 = vxor.u32 %v554_v51, %v488_v40  ;;  %v555_v61 = vshrl.u32 %v489_v52, 16  ;;  %v882_v63 = vmul.u32 3266489909, %v816_v53  ;;  %v421_v0 = vadd.s32 %v355_v56, %v1733_v2 }
 0x108   : > { %v817_v17 = vxor.u32 %v751_v54, %v685_v44  ;;  %v356_v4 = vadd.s32 %v1735_v3, %v289_v58  ;;  %v1013_v5 = vxor.u32 %v947_v23, %v881_v48  ;;  %v290_v7 = vmul.u32 128, %v222_v62  ;;  %v1150_v58 = vld [vmem:[%s1724_s5 + $0x1a8] sm:$0xff] }
 0x109   : > { %v686_v29 = vmul.u32 2246822507, %v620_v59  ;;  %v621_v33 = vxor.u32 %v555_v61, %v489_v52  ;;  %v948_v20 = vshrl.u32 %v882_v63, 16  ;;  %v490_v9 = vxor.u32 %v1754_v22, %v421_v0 }
 0x10a   : > { %v883_v32 = vmul.u32 3266489909, %v817_v17  ;;  %v422_v10 = vadd.s32 %v356_v4, %v1733_v2  ;;  %vm1079_vm0 = vcmp.ge.s32.totalorder %v1013_v5, 0  ;;  %v357_v34 = vadd.s32 %v1735_v3, %v290_v7  ;;  %v1151_v4 = vld [vmem:[%s1724_s5 + $0x1b0] sm:$0xff] }
 0x10b   : > { %v752_v12 = vshrl.u32 %v686_v29, 13  ;;  %v687_v46 = vmul.u32 2246822507, %v621_v33  ;;  %v1277_v13 = vsel %vm1079_vm0, %v1211_v16, 0.0  ;;  %v1014_v8 = vxor.u32 %v948_v20, %v882_v63 }
 0x10c   : > { %v949_v14 = vshrl.u32 %v883_v32, 16  ;;  %v556_v21 = vshrl.u32 %v490_v9, 16  ;;  %1343 = vst [vmem:[%s1793_s3 + $0x180] sm:$0xff] %v1277_v13  ;;  %v491_v11 = vxor.u32 %v1754_v22, %v422_v10  ;;  %v423_v55 = vadd.s32 %v357_v34, %v1733_v2 }
 0x10d   : > { %v818_v15 = vxor.u32 %v752_v12, %v686_v29  ;;  %v753_v43 = vshrl.u32 %v687_v46, 13  ;;  %vm1080_vm1 = vcmp.ge.s32.totalorder %v1014_v8, 0  ;;  %v223_v27 = vadd.s32 448, %v1731_v1 }
 0x10e   : > { %v1015_v47 = vxor.u32 %v949_v14, %v883_v32  ;;  %v622_v18 = vxor.u32 %v556_v21, %v490_v9  ;;  %v1278_v57 = vsel %vm1080_vm1, %v1212_v19, 0.0  ;;  %v557_v26 = vshrl.u32 %v491_v11, 16 }
 0x10f   : > { %v884_v49 = vmul.u32 3266489909, %v818_v15  ;;  %v819_v16 = vxor.u32 %v753_v43, %v687_v46  ;;  %1344 = vst [vmem:[%s1793_s3 + $0x188] sm:$0xff] %v1278_v57  ;;  %v492_v6 = vxor.u32 %v1754_v22, %v423_v55  ;;  %v1214_v35 = vadd.f32 %v1148_v25, %v1148_v25  ;;  %v1152_v15 = vld [vmem:[%s1724_s5 + $0x1b8] sm:$0xff] }
 0x110   : > { %vm1081_vm2 = vcmp.ge.s32.totalorder %v1015_v47, 0  ;;  %v688_v38 = vmul.u32 2246822507, %v622_v18  ;;  %v623_v28 = vxor.u32 %v557_v26, %v491_v11  ;;  %v291_v37 = vmul.u32 128, %v223_v27 }
 0x111   : > { %v1279_v60 = vsel %vm1081_vm2, %v1213_v50, 0.0  ;;  %v950_v24 = vshrl.u32 %v884_v49, 16  ;;  %v885_v30 = vmul.u32 3266489909, %v819_v16  ;;  %v558_v19 = vshrl.u32 %v492_v6, 16 }
 0x112   : > { %1345 = vst [vmem:[%s1793_s3 + $0x190] sm:$0xff] %v1279_v60  ;;  %v754_v36 = vshrl.u32 %v688_v38, 13  ;;  %v689_v42 = vmul.u32 2246822507, %v623_v28  ;;  %v224_v44 = vadd.s32 456, %v1731_v1  ;;  %v1215_v45 = vadd.f32 %v1149_v31, %v1149_v31 }
 0x113   : > { %v1016_v40 = vxor.u32 %v950_v24, %v884_v49  ;;  %v951_v41 = vshrl.u32 %v885_v30, 16  ;;  %v624_v48 = vxor.u32 %v558_v19, %v492_v6  ;;  %v358_v50 = vadd.s32 %v1735_v3, %v291_v37  ;;  %v1153_v6 = vld [vmem:[%s1724_s5 + $0x1c0] sm:$0xff] }
 0x114   : > { %v820_v39 = vxor.u32 %v754_v36, %v688_v38  ;;  %v755_v52 = vshrl.u32 %v689_v42, 13  ;;  %v292_v53 = vmul.u32 128, %v224_v44  ;;  %v225_v63 = vadd.s32 464, %v1731_v1 }
 0x115   : > { %vm1082_vm3 = vcmp.ge.s32.totalorder %v1016_v40, 0  ;;  %v1017_v51 = vxor.u32 %v951_v41, %v885_v30  ;;  %v690_v23 = vmul.u32 2246822507, %v624_v48  ;;  %v424_v59 = vadd.s32 %v358_v50, %v1733_v2 }
 0x116   : > { %v1280_v54 = vsel %vm1082_vm3, %v1214_v35, 0.0  ;;  %v886_v56 = vmul.u32 3266489909, %v820_v39  ;;  %v821_v61 = vxor.u32 %v755_v52, %v689_v42  ;;  %v359_v62 = vadd.s32 %v1735_v3, %v292_v53  ;;  %v1154_v42 = vld [vmem:[%s1724_s5 + $0x1c8] sm:$0xff] }
 0x117   : > { %1346 = vst [vmem:[%s1793_s3 + $0x198] sm:$0xff] %v1280_v54  ;;  %vm1083_vm4 = vcmp.ge.s32.totalorder %v1017_v51, 0  ;;  %v756_v5 = vshrl.u32 %v690_v23, 13  ;;  %v493_v29 = vxor.u32 %v1754_v22, %v424_v59  ;;  %v1216_v33 = vadd.f32 %v1150_v58, %v1150_v58 }
 0x118   : > { %v1281_v17 = vsel %vm1083_vm4, %v1215_v45, 0.0  ;;  %v952_v0 = vshrl.u32 %v886_v56, 16  ;;  %v887_v7 = vmul.u32 3266489909, %v821_v61  ;;  %v425_v20 = vadd.s32 %v359_v62, %v1733_v2 }
 0x119   : > { %1347 = vst [vmem:[%s1793_s3 + $0x1a0] sm:$0xff] %v1281_v17  ;;  %v293_v32 = vmul.u32 128, %v225_v63  ;;  %v822_v10 = vxor.u32 %v756_v5, %v690_v23  ;;  %v559_v12 = vshrl.u32 %v493_v29, 16  ;;  %v226_v46 = vadd.s32 472, %v1731_v1 }
 0x11a   : > { %v1018_v9 = vxor.u32 %v952_v0, %v886_v56  ;;  %v953_v34 = vshrl.u32 %v887_v7, 16  ;;  %v1217_v13 = vadd.f32 %v1151_v4, %v1151_v4  ;;  %v494_v8 = vxor.u32 %v1754_v22, %v425_v20 }
 0x11b   : > { %v360_v14 = vadd.s32 %v1735_v3, %v293_v32  ;;  %v888_v21 = vmul.u32 3266489909, %v822_v10  ;;  %v625_v43 = vxor.u32 %v559_v12, %v493_v29  ;;  %v294_v11 = vmul.u32 128, %v226_v46 }
 0x11c   : > { %vm1084_vm5 = vcmp.ge.s32.totalorder %v1018_v9, 0  ;;  %v1019_v47 = vxor.u32 %v953_v34, %v887_v7  ;;  %v560_v18 = vshrl.u32 %v494_v8, 16  ;;  %v227_v26 = vadd.s32 480, %v1731_v1  ;;  %v1155_v34 = vld [vmem:[%s1724_s5 + $0x1d0] sm:$0xff] }
 0x11d   : > { %v1282_v55 = vsel %vm1084_vm5, %v1216_v33, 0.0  ;;  %v426_v57 = vadd.s32 %v360_v14, %v1733_v2  ;;  %v954_v49 = vshrl.u32 %v888_v21, 16  ;;  %v691_v25 = vmul.u32 2246822507, %v625_v43 }
 0x11e   : > { %1348 = vst [vmem:[%s1793_s3 + $0x1a8] sm:$0xff] %v1282_v55  ;;  %v361_v16 = vadd.s32 %v1735_v3, %v294_v11  ;;  %vm1085_vm6 = vcmp.ge.s32.totalorder %v1019_v47, 0  ;;  %v1218_v38 = vadd.f32 %v1152_v15, %v1152_v15  ;;  %v626_v27 = vxor.u32 %v560_v18, %v494_v8 }
 0x11f   : > { %v495_v60 = vxor.u32 %v1754_v22, %v426_v57  ;;  %v1283_v24 = vsel %vm1085_vm6, %v1217_v13, 0.0  ;;  %v1020_v30 = vxor.u32 %v954_v49, %v888_v21  ;;  %v757_v31 = vshrl.u32 %v691_v25, 13 }
 0x120   : > { %v427_v28 = vadd.s32 %v361_v16, %v1733_v2  ;;  %1349 = vst [vmem:[%s1793_s3 + $0x1b0] sm:$0xff] %v1283_v24  ;;  %v692_v35 = vmul.u32 2246822507, %v626_v27  ;;  %v295_v19 = vmul.u32 128, %v227_v26  ;;  %v228_v37 = vadd.s32 488, %v1731_v1  ;;  %v1156_v16 = vld [vmem:[%s1724_s5 + $0x1d8] sm:$0xff] }
 0x121   : > { %v561_v36 = vshrl.u32 %v495_v60, 16  ;;  %vm1086_vm7 = vcmp.ge.s32.totalorder %v1020_v30, 0  ;;  %v823_v40 = vxor.u32 %v757_v31, %v691_v25  ;;  %v1219_v41 = vadd.f32 %v1153_v6, %v1153_v6 }
 0x122   : > { %v496_v44 = vxor.u32 %v1754_v22, %v427_v28  ;;  %v1284_v45 = vsel %vm1086_vm7, %v1218_v38, 0.0  ;;  %v758_v39 = vshrl.u32 %v692_v35, 13  ;;  %v362_v50 = vadd.s32 %v1735_v3, %v295_v19 }
 0x123   : > { %v627_v48 = vxor.u32 %v561_v36, %v495_v60  ;;  %1350 = vst [vmem:[%s1793_s3 + $0x1b8] sm:$0xff] %v1284_v45  ;;  %v889_v51 = vmul.u32 3266489909, %v823_v40  ;;  %v296_v53 = vmul.u32 128, %v228_v37  ;;  %v229_v54 = vadd.s32 496, %v1731_v1 }
 0x124   : > { %v562_v52 = vshrl.u32 %v496_v44, 16  ;;  %v824_v56 = vxor.u32 %v758_v39, %v692_v35  ;;  %v1220_v58 = vadd.f32 %v1154_v42, %v1154_v42  ;;  %v428_v59 = vadd.s32 %v362_v50, %v1733_v2 }
 0x125   : > { %v693_v23 = vmul.u32 2246822507, %v627_v48  ;;  %v955_v61 = vshrl.u32 %v889_v51, 16  ;;  %v363_v63 = vadd.s32 %v1735_v3, %v296_v53  ;;  %v297_v17 = vmul.u32 128, %v229_v54 }
 0x126   : > { %v628_v62 = vxor.u32 %v562_v52, %v496_v44  ;;  %v890_v0 = vmul.u32 3266489909, %v824_v56  ;;  %v497_v5 = vxor.u32 %v1754_v22, %v428_v59  ;;  %v230_v29 = vadd.s32 504, %v1731_v1 }
 0x127   : > { %v759_v4 = vshrl.u32 %v693_v23, 13  ;;  %v1021_v33 = vxor.u32 %v955_v61, %v889_v51  ;;  %v429_v20 = vadd.s32 %v363_v63, %v1733_v2  ;;  %v364_v32 = vadd.s32 %v1735_v3, %v297_v17  ;;  %v1157_v51 = vld [vmem:[%s1724_s5 + $0x1e0] sm:$0xff] }
 0x128   : > { %v694_v7 = vmul.u32 2246822507, %v628_v62  ;;  %v956_v9 = vshrl.u32 %v890_v0, 16  ;;  %v563_v12 = vshrl.u32 %v497_v5, 16  ;;  %v298_v46 = vmul.u32 128, %v230_v29 }
 0x129   : > { %v825_v10 = vxor.u32 %v759_v4, %v693_v23  ;;  %vm1087_vm8 = vcmp.ge.s32.totalorder %v1021_v33, 0  ;;  %v498_v8 = vxor.u32 %v1754_v22, %v429_v20  ;;  %v430_v14 = vadd.s32 %v364_v32, %v1733_v2  ;;  %v1159_v32 = vld [vmem:[%s1724_s5 + $0x1f0] sm:$0xff] }
 0x12a   : > { %v760_v13 = vshrl.u32 %v694_v7, 13  ;;  %v1285_v21 = vsel %vm1087_vm8, %v1219_v41, 0.0  ;;  %v1022_v15 = vxor.u32 %v956_v9, %v890_v0  ;;  %v629_v11 = vxor.u32 %v563_v12, %v497_v5  ;;  %v1158_v0 = vld [vmem:[%s1724_s5 + $0x1e8] sm:$0xff] }
 0x12b   : > { %v891_v43 = vmul.u32 3266489909, %v825_v10  ;;  %1351 = vst [vmem:[%s1793_s3 + $0x1c0] sm:$0xff] %v1285_v21  ;;  %v564_v47 = vshrl.u32 %v498_v8, 16  ;;  %v499_v18 = vxor.u32 %v1754_v22, %v430_v14  ;;  %v365_v57 = vadd.s32 %v1735_v3, %v298_v46 }
 0x12c   : > { %v826_v55 = vxor.u32 %v760_v13, %v694_v7  ;;  %vm1088_vm9 = vcmp.ge.s32.totalorder %v1022_v15, 0  ;;  %v1221_v25 = vadd.f32 %v1155_v34, %v1155_v34  ;;  %v695_v26 = vmul.u32 2246822507, %v629_v11 }
 0x12d   : > { %v957_v49 = vshrl.u32 %v891_v43, 16  ;;  %v1286_v38 = vsel %vm1088_vm9, %v1220_v58, 0.0  ;;  %v630_v27 = vxor.u32 %v564_v47, %v498_v8  ;;  %v565_v60 = vshrl.u32 %v499_v18, 16 }
 0x12e   : > { %v892_v6 = vmul.u32 3266489909, %v826_v55  ;;  %1352 = vst [vmem:[%s1793_s3 + $0x1c8] sm:$0xff] %v1286_v38  ;;  %v761_v30 = vshrl.u32 %v695_v26, 13  ;;  %v431_v31 = vadd.s32 %v365_v57, %v1733_v2  ;;  %v231_v28 = vadd.s32 512, %v1731_v1 }
 0x12f   : > { %v1023_v24 = vxor.u32 %v957_v49, %v891_v43  ;;  %v1222_v36 = vadd.f32 %v1156_v16, %v1156_v16  ;;  %v696_v19 = vmul.u32 2246822507, %v630_v27  ;;  %v631_v37 = vxor.u32 %v565_v60, %v499_v18  ;;  %v1160_v18 = vld [vmem:[%s1724_s5 + $0x1f8] sm:$0xff] }
 0x130   : > { %v958_v35 = vshrl.u32 %v892_v6, 16  ;;  %v827_v40 = vxor.u32 %v761_v30, %v695_v26  ;;  %v500_v41 = vxor.u32 %v1754_v22, %v431_v31  ;;  %v299_v42 = vmul.u32 128, %v231_v28 }
 0x131   : > { %vm1089_vm10 = vcmp.ge.s32.totalorder %v1023_v24, 0  ;;  %v762_v39 = vshrl.u32 %v696_v19, 13  ;;  %v697_v48 = vmul.u32 2246822507, %v631_v37  ;;  %v232_v54 = vadd.s32 520, %v1731_v1  ;;  %v1161_v24 = vld [vmem:[%s1724_s5 + $0x200] sm:$0xff] }
 0x132   : > { %v1287_v44 = vsel %vm1089_vm10, %v1221_v25, 0.0  ;;  %v1024_v45 = vxor.u32 %v958_v35, %v892_v6  ;;  %v893_v50 = vmul.u32 3266489909, %v827_v40  ;;  %v566_v52 = vshrl.u32 %v500_v41, 16  ;;  %v1162_v40 = vld [vmem:[%s1724_s5 + $0x208] sm:$0xff] }
 0x133   : > { %1353 = vst [vmem:[%s1793_s3 + $0x1d0] sm:$0xff] %v1287_v44  ;;  %v366_v53 = vadd.s32 %v1735_v3, %v299_v42  ;;  %v828_v56 = vxor.u32 %v762_v39, %v696_v19  ;;  %v763_v58 = vshrl.u32 %v697_v48, 13  ;;  %v1223_v63 = vadd.f32 %v1157_v51, %v1157_v51 }
 0x134   : > { %vm1090_vm11 = vcmp.ge.s32.totalorder %v1024_v45, 0  ;;  %v959_v59 = vshrl.u32 %v893_v50, 16  ;;  %v632_v61 = vxor.u32 %v566_v52, %v500_v41  ;;  %v300_v5 = vmul.u32 128, %v232_v54 }
 0x135   : > { %v1288_v23 = vsel %vm1090_vm11, %v1222_v36, 0.0  ;;  %v432_v62 = vadd.s32 %v366_v53, %v1733_v2  ;;  %v894_v17 = vmul.u32 3266489909, %v828_v56  ;;  %v829_v4 = vxor.u32 %v763_v58, %v697_v48 }
 0x136   : > { %1354 = vst [vmem:[%s1793_s3 + $0x1d8] sm:$0xff] %v1288_v23  ;;  %v1025_v29 = vxor.u32 %v959_v59, %v893_v50  ;;  %v698_v33 = vmul.u32 2246822507, %v632_v61  ;;  %v367_v9 = vadd.s32 %v1735_v3, %v300_v5  ;;  %v1224_v10 = vadd.f32 %v1158_v0, %v1158_v0 }
 0x137   : > { %v501_v1 = vxor.u32 %v1754_v22, %v432_v62  ;;  %v960_v7 = vshrl.u32 %v894_v17, 16  ;;  %v895_v20 = vmul.u32 3266489909, %v829_v4  ;;  %v1225_v21 = vadd.f32 %v1159_v32, %v1159_v32 }
 0x138   : > { %vm1091_vm12 = vcmp.ge.s32.totalorder %v1025_v29, 0  ;;  %v764_v12 = vshrl.u32 %v698_v33, 13  ;;  %v433_v14 = vadd.s32 %v367_v9, %v1733_v2  ;;  %v1226_v26 = vadd.f32 %v1160_v18, %v1160_v18 }
 0x139   : > { %v567_v46 = vshrl.u32 %v501_v1, 16  ;;  %v1289_v34 = vsel %vm1091_vm12, %v1223_v63, 0.0  ;;  %v1026_v13 = vxor.u32 %v960_v7, %v894_v17  ;;  %v961_v8 = vshrl.u32 %v895_v20, 16 }
 0x13a   : > { %1355 = vst [vmem:[%s1793_s3 + $0x1e0] sm:$0xff] %v1289_v34  ;;  %v830_v15 = vxor.u32 %v764_v12, %v698_v33  ;;  %v502_v3 = vxor.u32 %v1754_v22, %v433_v14  ;;  %v1227_v35 = vadd.f32 %v1161_v24, %v1161_v24  ;;  %v1228_v44 = vadd.f32 %v1162_v40, %v1162_v40 }
 0x13b   : > { %v633_v43 = vxor.u32 %v567_v46, %v501_v1  ;;  %vm1092_vm13 = vcmp.ge.s32.totalorder %v1026_v13, 0  ;;  %v1027_v11 = vxor.u32 %v961_v8, %v895_v20 }
 0x13c   : > { %v1290_v55 = vsel %vm1092_vm13, %v1224_v10, 0.0  ;;  %v896_v47 = vmul.u32 3266489909, %v830_v15  ;;  %v568_v49 = vshrl.u32 %v502_v3, 16 }
 0x13d   : > { %v699_v57 = vmul.u32 2246822507, %v633_v43  ;;  %1356 = vst [vmem:[%s1793_s3 + $0x1e8] sm:$0xff] %v1290_v55  ;;  %vm1093_vm14 = vcmp.ge.s32.totalorder %v1027_v11, 0 }
 0x13e   : > { %v1291_v25 = vsel %vm1093_vm14, %v1225_v21, 0.0  ;;  %v962_v2 = vshrl.u32 %v896_v47, 16  ;;  %v634_v38 = vxor.u32 %v568_v49, %v502_v3 }
 0x13f   : > { %v765_v16 = vshrl.u32 %v699_v57, 13  ;;  %1357 = vst [vmem:[%s1793_s3 + $0x1f0] sm:$0xff] %v1291_v25 }
 0x140   : > { %v1028_v6 = vxor.u32 %v962_v2, %v896_v47  ;;  %v700_v22 = vmul.u32 2246822507, %v634_v38 }
 0x141   : > { %v831_v27 = vxor.u32 %v765_v16, %v699_v57 }
 0x142   : > { %vm1094_vm15 = vcmp.ge.s32.totalorder %v1028_v6, 0  ;;  %v766_v31 = vshrl.u32 %v700_v22, 13 }
 0x143   : > { %v897_v60 = vmul.u32 3266489909, %v831_v27  ;;  %v1292_v30 = vsel %vm1094_vm15, %v1226_v26, 0.0 }
 0x144   : > { %1358 = vst [vmem:[%s1793_s3 + $0x1f8] sm:$0xff] %v1292_v30  ;;  %v832_v36 = vxor.u32 %v766_v31, %v700_v22 }
 0x145   : > { %v963_v28 = vshrl.u32 %v897_v60, 16 }
 0x146   : > { %v898_v37 = vmul.u32 3266489909, %v832_v36 }
 0x147   : > { %v1029_v19 = vxor.u32 %v963_v28, %v897_v60 }
 0x148   : > { %v964_v42 = vshrl.u32 %v898_v37, 16 }
 0x149   : > { %vm1095_vm0 = vcmp.ge.s32.totalorder %v1029_v19, 0 }
 0x14a   : > { %v1293_v41 = vsel %vm1095_vm0, %v1227_v35, 0.0  ;;  %v1030_v45 = vxor.u32 %v964_v42, %v898_v37 }
 0x14b   : > { %1359 = vst [vmem:[%s1793_s3 + $0x200] sm:$0xff] %v1293_v41 }
 0x14c   : > { %vm1096_vm1 = vcmp.ge.s32.totalorder %v1030_v45, 0 }
 0x14d   : > { %v1294_v39 = vsel %vm1096_vm1, %v1228_v44, 0.0 }
 0x14e   : > { %1360 = vst [vmem:[%s1793_s3 + $0x208] sm:$0xff] %v1294_v39 }
 0x14f   : > { %1551 = shalt.err (!%p1548_p9)
}
 0x150   : > { %s1552_s23 = scalar_lea.hbm %s2203_s9, 8448  ;;  %s1556_s27 = scalar_lea.hbm %s2250_s2, 33792 }
 0x151   : > { %p1553_p13 = scmp.ne.s32.totalorder %s2203_s9, %s1552_s23  ;;  %p1557_p2 = scmp.lt.s32.totalorder %s2203_s9, %s2250_s2 }
 0x152   : > { %p1558_p3 = scmp.lt.s32.totalorder %s1556_s27, %s1552_s23 }
 0x153   : > { %p1554_p1 = pnand %p1553_p13, %p2258_p11 }
 0x154   : > { %p1559_p6 = por %p1558_p3, %p1557_p2 }
 0x155   : > { %p1555_p0 = pneg %p1554_p1 }
 0x157   : > { %p1560_p10 = pnand %p1559_p6, %p1555_p0 }
 0x159   : > { %1563 = shalt.err (!%p1560_p10)
}
 0x15a   : > { %s1608_s28 = smov 128   ;;  %s1609_s29 = smov 8  }
 0x15b   : > { %1462 = dma.vmem_to_hbm [thread:$0]  (%p2258_p11), %s2205_s6, 8448, %s2203_s9, %s1362_s0, %s1608_s28, %s1608_s28, %s1609_s29  }
 0x15c PF: > { %p1473_p12 = scmp.ge.s32.totalorder %s1602_s14, 2  ;;  %s1390_s20 = sand.u32 1, %s1590_s11  }
 0x15d   : > { %p2259_p4 = scmp.ne.s32.totalorder %s2255_s22, 0  ;;  %s1391_s3 = scalar_lea.sflag [#allocation5], %s1390_s20 }
 0x15f   : > { %p1469_p5 = pnand %p1473_p12, %p2259_p4 }
 0x161   : > { %p1470_p7 = pneg %p1469_p5 }
 0x163   : > { %1585 = dma.done.wait (%p1470_p7), %s1391_s3, 8448  }
 0x164   : > { %1587 = vsyncadd (%p1470_p7), %s1391_s3, 4294958848  ;;  %p16_p8 = scmp.ge.s32.totalorder %s1653_s16, 6   ;;  %s2260_s11 = smov %s1594_s12 }
 0x165   : > { %s2261_s12 = smov %s1598_s13  ;;  %s2262_s13 = smov %s1665_s19 }
 0x166   : > { %s2263_s14 = smov %s1653_s16  ;;  %18 = sbr.rel (!%p16_p8) target bundleno = 7 (0x7), region = 73 }
 0x16b   :  { %1396 = vsyncpa [#allocation4], 1 }
 0x16c   :  { %1398 = vsyncpa [#allocation4 + $0x1], 1 }
 0x16d   :  { %1399 = vsyncpa [#allocation5], 1 }
 0x16e   :  { %1401 = vsyncpa [#allocation5 + $0x1], 1 }

</bundles_post_ra>
